<compile_context>
chip_gen: v5e
topology: v5e:2x2
jax: 0.10.0
libtpu: 0.0.40
codegen_flags: <defaults>
</compile_context>

<pallas_src>
import math

import jax
import jax.numpy as jnp
from jax.experimental import pallas as pl
from jax.experimental.pallas import tpu as pltpu


# ----------------------------- Pallas kernel --------------------------------
def sgff_kernel(d_ref, p_ref, pe_d_ref, pe_p_ref,
                wq_ref, bq_ref, wk_ref, bk_ref,
                wdp_ref, bdp_ref, wpd_ref, bpd_ref,
                pair_ref, dattn_ref, pattn_ref):
    Bb, Nd, H = d_ref.shape
    Np = p_ref.shape[1]
    nh = wdp_ref.shape[0]
    dk = H // nh

    scale = 1.0 / math.sqrt(dk)
    half_inv_np = 0.5 / Np
    half_inv_nd = 0.5 / Nd

    # Hoisted weight loads / casts: once per grid step, not per batch element.
    wq_bf = wq_ref[...].astype(jnp.bfloat16)      # (H, H)  PyTorch (out, in) layout
    wk_bf = wk_ref[...].astype(jnp.bfloat16)
    bq = bq_ref[...]                              # (H, 1) column bias
    bk = bk_ref[...]
    wdp = wdp_ref[...]                            # (nh, H) = Wdp^T  (f32, VPU rank-1 MAC)
    wpd = wpd_ref[...]                            # (nh, H) = Wpd^T
    bdp = bdp_ref[...]                            # (1, H)
    bpd = bpd_ref[...]

    for b in range(Bb):                           # Bb is small & compile-time constant
        # positional encoding: pe row indexed by *batch* index, broadcast over seq
        # (faithful to the PyTorch `x + pe[:x.size(0)]` quirk with batch-first input).
        d = d_ref[b] + pe_d_ref[b]                # (Nd, H) f32
        p = p_ref[b] + pe_p_ref[b]                # (Np, H) f32
        # TODO(synk): TransformerBlock applied here in the reference model (undefined) -> identity.

        # Transposed projections: Q^T = Wq @ d^T + bq, K^T = Wk @ p^T + bk.
        # H lands on the sublane axis -> per-head slices below are free sublane groups.
        Qt = jax.lax.dot_general(wq_bf, d.astype(jnp.bfloat16),
                                 (((1,), (1,)), ((), ())),
                                 preferred_element_type=jnp.float32) + bq    # (H, Nd) f32
        Kt = jax.lax.dot_general(wk_bf, p.astype(jnp.bfloat16),
                                 (((1,), (1,)), ((), ())),
                                 preferred_element_type=jnp.float32) + bk    # (H, Np) f32

        dattn_logits = None          # (Nd, H) rank-1 accumulation over heads
        rows_p = []                  # per-head (1, Np) rows for the protein gate

        for h in range(nh):
            # f32 sublane slices (aligned, free), cast to bf16 only for the MXU.
            Qh = Qt[h * dk:(h + 1) * dk, :].astype(jnp.bfloat16)   # (dk, Nd)
            Kh = Kt[h * dk:(h + 1) * dk, :].astype(jnp.bfloat16)   # (dk, Np)
            S = jax.lax.dot_general(Qh, Kh, (((0,), (0,)), ((), ())),
                                    preferred_element_type=jnp.float32) * scale  # (Nd, Np)

            # Single exponential shared by both softmaxes (shift-invariant global max).
            E = jnp.exp(S - jnp.max(S))                                           # (Nd, Np)
            inv_row = pl.reciprocal(jnp.sum(E, axis=1, keepdims=True), approx=True)  # (Nd,1)
            inv_col = pl.reciprocal(jnp.sum(E, axis=0, keepdims=True), approx=True)  # (1,Np)

            # mean(M,-1) = 0.5/Np + 0.5*mean(att_pd,-1) ; mean(M,-2) = 0.5/Nd + 0.5*mean(att_dp,-2)
            col_d = half_inv_np + half_inv_np * jnp.sum(E * inv_col, axis=1, keepdims=True)  # (Nd,1)
            row_p = half_inv_nd + half_inv_nd * jnp.sum(E * inv_row, axis=0, keepdims=True)  # (1,Np)

            # drug gate: rank-1 VPU MAC instead of lane-concat + tiny-K matmul
            upd = col_d * wdp[h:h + 1, :]                         # (Nd,1)*(1,H) -> (Nd,H)
            dattn_logits = upd if dattn_logits is None else dattn_logits + upd
            rows_p.append(row_p)

        dattn = jax.nn.sigmoid(dattn_logits + bdp)                # (Nd, H)

        # protein gate: consume the natural (nh, Np) row layout via a trans_a matmul
        mean_pd_T = jnp.concatenate(rows_p, axis=0)               # (nh, Np) sublane concat
        pattn = jax.nn.sigmoid(
            jax.lax.dot_general(mean_pd_T, wpd, (((0,), (0,)), ((), ())),
                                preferred_element_type=jnp.float32) + bpd)   # (Np, H)

        d_out = d + d * dattn
        p_out = p + p * pattn

        dattn_ref[b] = dattn
        pattn_ref[b] = pattn
        # pair as two full (1, H) rows -> lane-dense store; reshaped to (B, 2H) in wrapper
        pair_ref[b] = jnp.concatenate(
            [jnp.max(d_out, axis=0, keepdims=True),
             jnp.max(p_out, axis=0, keepdims=True)], axis=0)      # (2, H)


# ------------------------------ wrapper --------------------------------------
def sgff_forward(drug, protein, params, pe_drug, pe_prot, num_heads, block_b=None):
    B, Nd, H = drug.shape
    Np = protein.shape[1]
    nh = num_heads

    # Batch-block the grid.  Heuristic: amortize per-step overhead but keep >= 2 grid
    # steps so ("parallel",) can split work across v7x's two TensorCores.
    if block_b is None:
        block_b = max(1, min(8, B // 2)) if B >= 2 else 1
    Bb = int(block_b)
    n_blk = pl.cdiv(B, Bb)
    Bpad = n_blk * Bb

    # pe row indexed by batch (as in the PyTorch code), broadcast over seq in-kernel
    pe_d_b = pe_drug[:B][:, None, :]    # (B, 1, H)
    pe_p_b = pe_prot[:B][:, None, :]    # (B, 1, H)

    d_in, p_in = drug, protein
    if Bpad != B:
        pad = Bpad - B
        d_in = jnp.pad(d_in, ((0, pad), (0, 0), (0, 0)))
        p_in = jnp.pad(p_in, ((0, pad), (0, 0), (0, 0)))
        pe_d_b = jnp.pad(pe_d_b, ((0, pad), (0, 0), (0, 0)))
        pe_p_b = jnp.pad(pe_p_b, ((0, pad), (0, 0), (0, 0)))

    wq = params["wq"]                   # (H, H)  PyTorch layout (out, in) — used directly
    wk = params["wk"]
    bq_c = params["bq"][:, None]        # (H, 1)  column bias for the transposed projection
    bk_c = params["bk"][:, None]
    wdp_t = params["wdp"].T             # (nh, H)
    wpd_t = params["wpd"].T
    bdp = params["bdp"][None, :]        # (1, H)
    bpd = params["bpd"][None, :]

    pair3, dattn, pattn = pl.pallas_call(
        sgff_kernel,
        out_shape=(
            jax.ShapeDtypeStruct((Bpad, 2, H), jnp.float32),
            jax.ShapeDtypeStruct((Bpad, Nd, H), jnp.float32),
            jax.ShapeDtypeStruct((Bpad, Np, H), jnp.float32),
        ),
        grid=(n_blk,),
        in_specs=[
            pl.BlockSpec((Bb, Nd, H), lambda g: (g, 0, 0)),   # drug block
            pl.BlockSpec((Bb, Np, H), lambda g: (g, 0, 0)),   # protein block
            pl.BlockSpec((Bb, 1, H), lambda g: (g, 0, 0)),    # pe_drug rows (per batch)
            pl.BlockSpec((Bb, 1, H), lambda g: (g, 0, 0)),    # pe_prot rows
            pl.BlockSpec((H, H), lambda g: (0, 0)),           # Wq (out, in)
            pl.BlockSpec((H, 1), lambda g: (0, 0)),           # bq column
            pl.BlockSpec((H, H), lambda g: (0, 0)),           # Wk (out, in)
            pl.BlockSpec((H, 1), lambda g: (0, 0)),           # bk column
            pl.BlockSpec((nh, H), lambda g: (0, 0)),          # Wdp^T
            pl.BlockSpec((1, H), lambda g: (0, 0)),           # bdp
            pl.BlockSpec((nh, H), lambda g: (0, 0)),          # Wpd^T
            pl.BlockSpec((1, H), lambda g: (0, 0)),           # bpd
        ],
        out_specs=(
            pl.BlockSpec((Bb, 2, H), lambda g: (g, 0, 0)),
            pl.BlockSpec((Bb, Nd, H), lambda g: (g, 0, 0)),
            pl.BlockSpec((Bb, Np, H), lambda g: (g, 0, 0)),
        ),
        compiler_params=pltpu.CompilerParams(dimension_semantics=("parallel",)),
    )(d_in, p_in, pe_d_b, pe_p_b, wq, bq_c, wk, bk_c, wdp_t, bdp, wpd_t, bpd)

    pair = pair3[:B].reshape(B, 2 * H)      # row 0 = drug max, row 1 = protein max
    return pair, (dattn[:B], pattn[:B])


# --------------------------- pure-JAX reference -------------------------------
def sgff_reference(drug, protein, params, pe_drug, pe_prot, num_heads):
    B, Nd, H = drug.shape
    Np = protein.shape[1]
    nh, dk = num_heads, H // num_heads

    d = drug + pe_drug[:B][:, None, :]
    p = protein + pe_prot[:B][:, None, :]
    # TransformerBlock treated as identity (undefined in reference source)

    Q = d @ params["wq"].T + params["bq"]
    K = p @ params["wk"].T + params["bk"]
    Q = Q.reshape(B, Nd, nh, dk).transpose(0, 2, 1, 3)
    K = K.reshape(B, Np, nh, dk).transpose(0, 2, 1, 3)
    attn = jnp.einsum("bhid,bhjd->bhij", Q, K) / math.sqrt(dk)

    att_dp = jax.nn.softmax(attn, axis=-1)
    att_pd = jax.nn.softmax(attn, axis=-2)
    M = 0.5 * att_dp + 0.5 * att_pd

    drug_attn = jax.nn.sigmoid(
        jnp.swapaxes(jnp.mean(M, axis=-1), -1, -2) @ params["wdp"].T + params["bdp"])
    prot_attn = jax.nn.sigmoid(
        jnp.swapaxes(jnp.mean(M, axis=-2), -1, -2) @ params["wpd"].T + params["bpd"])

    d_out = d + d * drug_attn
    p_out = p + p * prot_attn
    pair = jnp.concatenate([jnp.max(d_out, axis=1), jnp.max(p_out, axis=1)], axis=1)
    return pair, (drug_attn, prot_attn)


# ------------------------------ setup / main ----------------------------------
def positional_encoding_table(max_len, d_model):
    position = jnp.arange(max_len, dtype=jnp.float32)[:, None]
    div_term = jnp.exp(jnp.arange(0, d_model, 2, dtype=jnp.float32)
                       * (-math.log(10000.0) / d_model))
    pe = jnp.zeros((max_len, d_model), jnp.float32)
    pe = pe.at[:, 0::2].set(jnp.sin(position * div_term))
    pe = pe.at[:, 1::2].set(jnp.cos(position * div_term))
    return pe  # (max_len, d_model)


if __name__ == "__main__":
    # small config: Hidden_Dim=32, Num_Heads=4, Drug.Nodes=16, Protein.CNN_Length=24, batch=4
    B, H, NH = 4, 32, 4
    ND, NP = 16, 24

    key = jax.random.PRNGKey(0)
    ks = jax.random.split(key, 12)
    drug = jax.random.normal(ks[0], (B, ND, H), jnp.float32)
    protein = jax.random.normal(ks[1], (B, NP, H), jnp.float32)

    params = {
        "wq": jax.random.normal(ks[2], (H, H), jnp.float32) * 0.1,
        "bq": jax.random.normal(ks[3], (H,), jnp.float32) * 0.1,
        "wk": jax.random.normal(ks[4], (H, H), jnp.float32) * 0.1,
        "bk": jax.random.normal(ks[5], (H,), jnp.float32) * 0.1,
        "wdp": jax.random.normal(ks[6], (H, NH), jnp.float32) * 0.1,   # Linear(nh -> H) weight
        "bdp": jax.random.normal(ks[7], (H,), jnp.float32) * 0.1,
        "wpd": jax.random.normal(ks[8], (H, NH), jnp.float32) * 0.1,
        "bpd": jax.random.normal(ks[9], (H,), jnp.float32) * 0.1,
    }

    pe_drug = positional_encoding_table(ND, H)   # max_len = Drug.Nodes
    pe_prot = positional_encoding_table(NP, H)   # max_len = Protein.CNN_Length

    pair, (dattn, pattn) = sgff_forward(drug, protein, params, pe_drug, pe_prot, NH)
    jax.block_until_ready((pair, dattn, pattn))

    # correctness check against the pure-JAX reference
    pair_r, (dattn_r, pattn_r) = sgff_reference(drug, protein, params, pe_drug, pe_prot, NH)
    assert pair.shape == (B, 2 * H)
    assert dattn.shape == (B, ND, H) and pattn.shape == (B, NP, H)
    assert jnp.allclose(pair, pair_r, atol=2e-3, rtol=2e-3)
    assert jnp.allclose(dattn, dattn_r, atol=2e-3, rtol=2e-3)
    assert jnp.allclose(pattn, pattn_r, atol=2e-3, rtol=2e-3)

    print("KERNEL_OK")
</pallas_src>

<mosaic_0001>
module attributes {stable_mosaic.version = 11 : i64} {
  func.func @sgff_kernel(%arg0: i32, %arg1: memref<2x16x32xf32, #tpu.memory_space<vmem>>, %arg2: memref<2x24x32xf32, #tpu.memory_space<vmem>>, %arg3: memref<2x1x32xf32, #tpu.memory_space<vmem>>, %arg4: memref<2x1x32xf32, #tpu.memory_space<vmem>>, %arg5: memref<32x32xf32, #tpu.memory_space<vmem>>, %arg6: memref<32x1xf32, #tpu.memory_space<vmem>>, %arg7: memref<32x32xf32, #tpu.memory_space<vmem>>, %arg8: memref<32x1xf32, #tpu.memory_space<vmem>>, %arg9: memref<4x32xf32, #tpu.memory_space<vmem>>, %arg10: memref<1x32xf32, #tpu.memory_space<vmem>>, %arg11: memref<4x32xf32, #tpu.memory_space<vmem>>, %arg12: memref<1x32xf32, #tpu.memory_space<vmem>>, %arg13: memref<2x2x32xf32, #tpu.memory_space<vmem>>, %arg14: memref<2x16x32xf32, #tpu.memory_space<vmem>>, %arg15: memref<2x24x32xf32, #tpu.memory_space<vmem>>) attributes {dimension_semantics = [#tpu.dimension_semantics<parallel>], iteration_bounds = array<i64: 2>, scalar_prefetch = 0 : i64, scratch_operands = 0 : i64, tpu.core_type = #tpu.core_type<tc>, window_params = [{transform_indices = @transform_0, window_bounds = array<i64: 2, 16, 32>}, {transform_indices = @transform_1, window_bounds = array<i64: 2, 24, 32>}, {transform_indices = @transform_2, window_bounds = array<i64: 2, 1, 32>}, {transform_indices = @transform_3, window_bounds = array<i64: 2, 1, 32>}, {pipeline_mode = #tpu.pipeline_mode<synchronous>, transform_indices = @transform_4, window_bounds = array<i64: 32, 32>}, {pipeline_mode = #tpu.pipeline_mode<synchronous>, transform_indices = @transform_5, window_bounds = array<i64: 32, 1>}, {pipeline_mode = #tpu.pipeline_mode<synchronous>, transform_indices = @transform_6, window_bounds = array<i64: 32, 32>}, {pipeline_mode = #tpu.pipeline_mode<synchronous>, transform_indices = @transform_7, window_bounds = array<i64: 32, 1>}, {pipeline_mode = #tpu.pipeline_mode<synchronous>, transform_indices = @transform_8, window_bounds = array<i64: 4, 32>}, {pipeline_mode = #tpu.pipeline_mode<synchronous>, transform_indices = @transform_9, window_bounds = array<i64: 1, 32>}, {pipeline_mode = #tpu.pipeline_mode<synchronous>, transform_indices = @transform_10, window_bounds = array<i64: 4, 32>}, {pipeline_mode = #tpu.pipeline_mode<synchronous>, transform_indices = @transform_11, window_bounds = array<i64: 1, 32>}, {transform_indices = @transform_12, window_bounds = array<i64: 2, 2, 32>}, {transform_indices = @transform_13, window_bounds = array<i64: 2, 16, 32>}, {transform_indices = @transform_14, window_bounds = array<i64: 2, 24, 32>}]} {
    %c0 = arith.constant 0 : index
    %c0_0 = arith.constant 0 : index
    %0 = vector.load %arg5[%c0, %c0_0] : memref<32x32xf32, #tpu.memory_space<vmem>>, vector<32x32xf32>
    %1 = arith.truncf %0 : vector<32x32xf32> to vector<32x32xbf16>
    %c0_1 = arith.constant 0 : index
    %c0_2 = arith.constant 0 : index
    %2 = vector.load %arg7[%c0_1, %c0_2] : memref<32x32xf32, #tpu.memory_space<vmem>>, vector<32x32xf32>
    %3 = arith.truncf %2 : vector<32x32xf32> to vector<32x32xbf16>
    %c0_3 = arith.constant 0 : index
    %c0_4 = arith.constant 0 : index
    %4 = vector.load %arg6[%c0_3, %c0_4] : memref<32x1xf32, #tpu.memory_space<vmem>>, vector<32x1xf32>
    %c0_5 = arith.constant 0 : index
    %c0_6 = arith.constant 0 : index
    %5 = vector.load %arg8[%c0_5, %c0_6] : memref<32x1xf32, #tpu.memory_space<vmem>>, vector<32x1xf32>
    %c0_7 = arith.constant 0 : index
    %c0_8 = arith.constant 0 : index
    %6 = vector.load %arg9[%c0_7, %c0_8] : memref<4x32xf32, #tpu.memory_space<vmem>>, vector<4x32xf32>
    %c0_9 = arith.constant 0 : index
    %c0_10 = arith.constant 0 : index
    %7 = vector.load %arg11[%c0_9, %c0_10] : memref<4x32xf32, #tpu.memory_space<vmem>>, vector<4x32xf32>
    %c0_11 = arith.constant 0 : index
    %c0_12 = arith.constant 0 : index
    %8 = vector.load %arg10[%c0_11, %c0_12] : memref<1x32xf32, #tpu.memory_space<vmem>>, vector<1x32xf32>
    %c0_13 = arith.constant 0 : index
    %c0_14 = arith.constant 0 : index
    %9 = vector.load %arg12[%c0_13, %c0_14] : memref<1x32xf32, #tpu.memory_space<vmem>>, vector<1x32xf32>
    %c0_15 = arith.constant 0 : index
    %c0_16 = arith.constant 0 : index
    %c0_17 = arith.constant 0 : index
    %10 = vector.load %arg1[%c0_15, %c0_16, %c0_17] : memref<2x16x32xf32, #tpu.memory_space<vmem>>, vector<1x16x32xf32>
    %11 = vector.shape_cast %10 : vector<1x16x32xf32> to vector<16x32xf32>
    %c0_18 = arith.constant 0 : index
    %c0_19 = arith.constant 0 : index
    %c0_20 = arith.constant 0 : index
    %12 = vector.load %arg3[%c0_18, %c0_19, %c0_20] : memref<2x1x32xf32, #tpu.memory_space<vmem>>, vector<1x1x32xf32>
    %13 = vector.shape_cast %12 : vector<1x1x32xf32> to vector<1x32xf32>
    %14 = vector.broadcast %13 : vector<1x32xf32> to vector<16x32xf32>
    %15 = arith.addf %11, %14 : vector<16x32xf32>
    %c0_21 = arith.constant 0 : index
    %c0_22 = arith.constant 0 : index
    %c0_23 = arith.constant 0 : index
    %16 = vector.load %arg2[%c0_21, %c0_22, %c0_23] : memref<2x24x32xf32, #tpu.memory_space<vmem>>, vector<1x24x32xf32>
    %17 = vector.shape_cast %16 : vector<1x24x32xf32> to vector<24x32xf32>
    %c0_24 = arith.constant 0 : index
    %c0_25 = arith.constant 0 : index
    %c0_26 = arith.constant 0 : index
    %18 = vector.load %arg4[%c0_24, %c0_25, %c0_26] : memref<2x1x32xf32, #tpu.memory_space<vmem>>, vector<1x1x32xf32>
    %19 = vector.shape_cast %18 : vector<1x1x32xf32> to vector<1x32xf32>
    %20 = vector.broadcast %19 : vector<1x32xf32> to vector<24x32xf32>
    %21 = arith.addf %17, %20 : vector<24x32xf32>
    %22 = arith.truncf %15 : vector<16x32xf32> to vector<16x32xbf16>
    %cst = arith.constant dense<0.000000e+00> : vector<32x16xf32>
    %23 = tpu.matmul %1, %22, %cst {dimension_numbers = #tpu.dot_dimension_numbers<[1], [1], [0], [0], [0, 0, 1, 0], [], []>} : vector<32x32xbf16>, vector<16x32xbf16>, vector<32x16xf32> -> vector<32x16xf32>
    %24 = vector.broadcast %4 : vector<32x1xf32> to vector<32x16xf32>
    %25 = arith.addf %23, %24 : vector<32x16xf32>
    %26 = arith.truncf %21 : vector<24x32xf32> to vector<24x32xbf16>
    %cst_27 = arith.constant dense<0.000000e+00> : vector<32x24xf32>
    %27 = tpu.matmul %3, %26, %cst_27 {dimension_numbers = #tpu.dot_dimension_numbers<[1], [1], [0], [0], [0, 0, 1, 0], [], []>} : vector<32x32xbf16>, vector<24x32xbf16>, vector<32x24xf32> -> vector<32x24xf32>
    %28 = vector.broadcast %5 : vector<32x1xf32> to vector<32x24xf32>
    %29 = arith.addf %27, %28 : vector<32x24xf32>
    %30 = vector.extract_strided_slice %25 {offsets = [0, 0], sizes = [8, 16], strides = [1, 1]} : vector<32x16xf32> to vector<8x16xf32>
    %31 = arith.truncf %30 : vector<8x16xf32> to vector<8x16xbf16>
    %32 = vector.extract_strided_slice %29 {offsets = [0, 0], sizes = [8, 24], strides = [1, 1]} : vector<32x24xf32> to vector<8x24xf32>
    %33 = arith.truncf %32 : vector<8x24xf32> to vector<8x24xbf16>
    %cst_28 = arith.constant dense<0.000000e+00> : vector<16x24xf32>
    %34 = tpu.matmul %31, %33, %cst_28 {dimension_numbers = #tpu.dot_dimension_numbers<[0], [0], [1], [1], [0, 1, 1, 1], [], []>} : vector<8x16xbf16>, vector<8x24xbf16>, vector<16x24xf32> -> vector<16x24xf32>
    %cst_29 = arith.constant 0.353553385 : f32
    %35 = vector.broadcast %cst_29 : f32 to vector<16x24xf32>
    %36 = arith.mulf %34, %35 : vector<16x24xf32>
    %37 = vector.shape_cast %36 : vector<16x24xf32> to vector<1x16x24xf32>
    %cst_30 = arith.constant dense<0xFF800000> : vector<1xf32>
    %38 = vector.multi_reduction <maximumf>, %37, %cst_30 [1, 2] : vector<1x16x24xf32> to vector<1xf32>
    %39 = vector.shape_cast %38 : vector<1xf32> to vector<1x1x1xf32>
    %40 = vector.extract %39[0, 0, 0] : f32 from vector<1x1x1xf32>
    %41 = vector.broadcast %40 : f32 to vector<16x24xf32>
    %42 = arith.subf %36, %41 : vector<16x24xf32>
    %43 = math.exp %42 : vector<16x24xf32>
    %cst_31 = arith.constant dense<0.000000e+00> : vector<16xf32>
    %44 = vector.multi_reduction <add>, %43, %cst_31 [1] : vector<16x24xf32> to vector<16xf32>
    %45 = vector.shape_cast %44 : vector<16xf32> to vector<16x1xf32>
    %46 = tpu.reciprocal %45 {approx = true} : vector<16x1xf32> -> vector<16x1xf32>
    %cst_32 = arith.constant dense<0.000000e+00> : vector<24xf32>
    %47 = vector.multi_reduction <add>, %43, %cst_32 [0] : vector<16x24xf32> to vector<24xf32>
    %48 = vector.shape_cast %47 : vector<24xf32> to vector<1x24xf32>
    %49 = tpu.reciprocal %48 {approx = true} : vector<1x24xf32> -> vector<1x24xf32>
    %50 = vector.broadcast %49 : vector<1x24xf32> to vector<16x24xf32>
    %51 = arith.mulf %43, %50 : vector<16x24xf32>
    %cst_33 = arith.constant dense<0.000000e+00> : vector<16xf32>
    %52 = vector.multi_reduction <add>, %51, %cst_33 [1] : vector<16x24xf32> to vector<16xf32>
    %53 = vector.shape_cast %52 : vector<16xf32> to vector<16x1xf32>
    %cst_34 = arith.constant 0.020833334 : f32
    %54 = vector.broadcast %cst_34 : f32 to vector<16x1xf32>
    %55 = arith.mulf %54, %53 : vector<16x1xf32>
    %cst_35 = arith.constant 0.020833334 : f32
    %56 = vector.broadcast %cst_35 : f32 to vector<16x1xf32>
    %57 = arith.addf %56, %55 : vector<16x1xf32>
    %58 = vector.broadcast %46 : vector<16x1xf32> to vector<16x24xf32>
    %59 = arith.mulf %43, %58 : vector<16x24xf32>
    %cst_36 = arith.constant dense<0.000000e+00> : vector<24xf32>
    %60 = vector.multi_reduction <add>, %59, %cst_36 [0] : vector<16x24xf32> to vector<24xf32>
    %61 = vector.shape_cast %60 : vector<24xf32> to vector<1x24xf32>
    %cst_37 = arith.constant 3.125000e-02 : f32
    %62 = vector.broadcast %cst_37 : f32 to vector<1x24xf32>
    %63 = arith.mulf %62, %61 : vector<1x24xf32>
    %cst_38 = arith.constant 3.125000e-02 : f32
    %64 = vector.broadcast %cst_38 : f32 to vector<1x24xf32>
    %65 = arith.addf %64, %63 : vector<1x24xf32>
    %66 = vector.extract_strided_slice %6 {offsets = [0, 0], sizes = [1, 32], strides = [1, 1]} : vector<4x32xf32> to vector<1x32xf32>
    %67 = vector.broadcast %57 : vector<16x1xf32> to vector<16x32xf32>
    %68 = vector.broadcast %66 : vector<1x32xf32> to vector<16x32xf32>
    %69 = arith.mulf %67, %68 : vector<16x32xf32>
    %70 = vector.extract_strided_slice %25 {offsets = [8, 0], sizes = [8, 16], strides = [1, 1]} : vector<32x16xf32> to vector<8x16xf32>
    %71 = arith.truncf %70 : vector<8x16xf32> to vector<8x16xbf16>
    %72 = vector.extract_strided_slice %29 {offsets = [8, 0], sizes = [8, 24], strides = [1, 1]} : vector<32x24xf32> to vector<8x24xf32>
    %73 = arith.truncf %72 : vector<8x24xf32> to vector<8x24xbf16>
    %cst_39 = arith.constant dense<0.000000e+00> : vector<16x24xf32>
    %74 = tpu.matmul %71, %73, %cst_39 {dimension_numbers = #tpu.dot_dimension_numbers<[0], [0], [1], [1], [0, 1, 1, 1], [], []>} : vector<8x16xbf16>, vector<8x24xbf16>, vector<16x24xf32> -> vector<16x24xf32>
    %cst_40 = arith.constant 0.353553385 : f32
    %75 = vector.broadcast %cst_40 : f32 to vector<16x24xf32>
    %76 = arith.mulf %74, %75 : vector<16x24xf32>
    %77 = vector.shape_cast %76 : vector<16x24xf32> to vector<1x16x24xf32>
    %cst_41 = arith.constant dense<0xFF800000> : vector<1xf32>
    %78 = vector.multi_reduction <maximumf>, %77, %cst_41 [1, 2] : vector<1x16x24xf32> to vector<1xf32>
    %79 = vector.shape_cast %78 : vector<1xf32> to vector<1x1x1xf32>
    %80 = vector.extract %79[0, 0, 0] : f32 from vector<1x1x1xf32>
    %81 = vector.broadcast %80 : f32 to vector<16x24xf32>
    %82 = arith.subf %76, %81 : vector<16x24xf32>
    %83 = math.exp %82 : vector<16x24xf32>
    %cst_42 = arith.constant dense<0.000000e+00> : vector<16xf32>
    %84 = vector.multi_reduction <add>, %83, %cst_42 [1] : vector<16x24xf32> to vector<16xf32>
    %85 = vector.shape_cast %84 : vector<16xf32> to vector<16x1xf32>
    %86 = tpu.reciprocal %85 {approx = true} : vector<16x1xf32> -> vector<16x1xf32>
    %cst_43 = arith.constant dense<0.000000e+00> : vector<24xf32>
    %87 = vector.multi_reduction <add>, %83, %cst_43 [0] : vector<16x24xf32> to vector<24xf32>
    %88 = vector.shape_cast %87 : vector<24xf32> to vector<1x24xf32>
    %89 = tpu.reciprocal %88 {approx = true} : vector<1x24xf32> -> vector<1x24xf32>
    %90 = vector.broadcast %89 : vector<1x24xf32> to vector<16x24xf32>
    %91 = arith.mulf %83, %90 : vector<16x24xf32>
    %cst_44 = arith.constant dense<0.000000e+00> : vector<16xf32>
    %92 = vector.multi_reduction <add>, %91, %cst_44 [1] : vector<16x24xf32> to vector<16xf32>
    %93 = vector.shape_cast %92 : vector<16xf32> to vector<16x1xf32>
    %cst_45 = arith.constant 0.020833334 : f32
    %94 = vector.broadcast %cst_45 : f32 to vector<16x1xf32>
    %95 = arith.mulf %94, %93 : vector<16x1xf32>
    %cst_46 = arith.constant 0.020833334 : f32
    %96 = vector.broadcast %cst_46 : f32 to vector<16x1xf32>
    %97 = arith.addf %96, %95 : vector<16x1xf32>
    %98 = vector.broadcast %86 : vector<16x1xf32> to vector<16x24xf32>
    %99 = arith.mulf %83, %98 : vector<16x24xf32>
    %cst_47 = arith.constant dense<0.000000e+00> : vector<24xf32>
    %100 = vector.multi_reduction <add>, %99, %cst_47 [0] : vector<16x24xf32> to vector<24xf32>
    %101 = vector.shape_cast %100 : vector<24xf32> to vector<1x24xf32>
    %cst_48 = arith.constant 3.125000e-02 : f32
    %102 = vector.broadcast %cst_48 : f32 to vector<1x24xf32>
    %103 = arith.mulf %102, %101 : vector<1x24xf32>
    %cst_49 = arith.constant 3.125000e-02 : f32
    %104 = vector.broadcast %cst_49 : f32 to vector<1x24xf32>
    %105 = arith.addf %104, %103 : vector<1x24xf32>
    %106 = vector.extract_strided_slice %6 {offsets = [1, 0], sizes = [1, 32], strides = [1, 1]} : vector<4x32xf32> to vector<1x32xf32>
    %107 = vector.broadcast %97 : vector<16x1xf32> to vector<16x32xf32>
    %108 = vector.broadcast %106 : vector<1x32xf32> to vector<16x32xf32>
    %109 = arith.mulf %107, %108 : vector<16x32xf32>
    %110 = arith.addf %69, %109 : vector<16x32xf32>
    %111 = vector.extract_strided_slice %25 {offsets = [16, 0], sizes = [8, 16], strides = [1, 1]} : vector<32x16xf32> to vector<8x16xf32>
    %112 = arith.truncf %111 : vector<8x16xf32> to vector<8x16xbf16>
    %113 = vector.extract_strided_slice %29 {offsets = [16, 0], sizes = [8, 24], strides = [1, 1]} : vector<32x24xf32> to vector<8x24xf32>
    %114 = arith.truncf %113 : vector<8x24xf32> to vector<8x24xbf16>
    %cst_50 = arith.constant dense<0.000000e+00> : vector<16x24xf32>
    %115 = tpu.matmul %112, %114, %cst_50 {dimension_numbers = #tpu.dot_dimension_numbers<[0], [0], [1], [1], [0, 1, 1, 1], [], []>} : vector<8x16xbf16>, vector<8x24xbf16>, vector<16x24xf32> -> vector<16x24xf32>
    %cst_51 = arith.constant 0.353553385 : f32
    %116 = vector.broadcast %cst_51 : f32 to vector<16x24xf32>
    %117 = arith.mulf %115, %116 : vector<16x24xf32>
    %118 = vector.shape_cast %117 : vector<16x24xf32> to vector<1x16x24xf32>
    %cst_52 = arith.constant dense<0xFF800000> : vector<1xf32>
    %119 = vector.multi_reduction <maximumf>, %118, %cst_52 [1, 2] : vector<1x16x24xf32> to vector<1xf32>
    %120 = vector.shape_cast %119 : vector<1xf32> to vector<1x1x1xf32>
    %121 = vector.extract %120[0, 0, 0] : f32 from vector<1x1x1xf32>
    %122 = vector.broadcast %121 : f32 to vector<16x24xf32>
    %123 = arith.subf %117, %122 : vector<16x24xf32>
    %124 = math.exp %123 : vector<16x24xf32>
    %cst_53 = arith.constant dense<0.000000e+00> : vector<16xf32>
    %125 = vector.multi_reduction <add>, %124, %cst_53 [1] : vector<16x24xf32> to vector<16xf32>
    %126 = vector.shape_cast %125 : vector<16xf32> to vector<16x1xf32>
    %127 = tpu.reciprocal %126 {approx = true} : vector<16x1xf32> -> vector<16x1xf32>
    %cst_54 = arith.constant dense<0.000000e+00> : vector<24xf32>
    %128 = vector.multi_reduction <add>, %124, %cst_54 [0] : vector<16x24xf32> to vector<24xf32>
    %129 = vector.shape_cast %128 : vector<24xf32> to vector<1x24xf32>
    %130 = tpu.reciprocal %129 {approx = true} : vector<1x24xf32> -> vector<1x24xf32>
    %131 = vector.broadcast %130 : vector<1x24xf32> to vector<16x24xf32>
    %132 = arith.mulf %124, %131 : vector<16x24xf32>
    %cst_55 = arith.constant dense<0.000000e+00> : vector<16xf32>
    %133 = vector.multi_reduction <add>, %132, %cst_55 [1] : vector<16x24xf32> to vector<16xf32>
    %134 = vector.shape_cast %133 : vector<16xf32> to vector<16x1xf32>
    %cst_56 = arith.constant 0.020833334 : f32
    %135 = vector.broadcast %cst_56 : f32 to vector<16x1xf32>
    %136 = arith.mulf %135, %134 : vector<16x1xf32>
    %cst_57 = arith.constant 0.020833334 : f32
    %137 = vector.broadcast %cst_57 : f32 to vector<16x1xf32>
    %138 = arith.addf %137, %136 : vector<16x1xf32>
    %139 = vector.broadcast %127 : vector<16x1xf32> to vector<16x24xf32>
    %140 = arith.mulf %124, %139 : vector<16x24xf32>
    %cst_58 = arith.constant dense<0.000000e+00> : vector<24xf32>
    %141 = vector.multi_reduction <add>, %140, %cst_58 [0] : vector<16x24xf32> to vector<24xf32>
    %142 = vector.shape_cast %141 : vector<24xf32> to vector<1x24xf32>
    %cst_59 = arith.constant 3.125000e-02 : f32
    %143 = vector.broadcast %cst_59 : f32 to vector<1x24xf32>
    %144 = arith.mulf %143, %142 : vector<1x24xf32>
    %cst_60 = arith.constant 3.125000e-02 : f32
    %145 = vector.broadcast %cst_60 : f32 to vector<1x24xf32>
    %146 = arith.addf %145, %144 : vector<1x24xf32>
    %147 = vector.extract_strided_slice %6 {offsets = [2, 0], sizes = [1, 32], strides = [1, 1]} : vector<4x32xf32> to vector<1x32xf32>
    %148 = vector.broadcast %138 : vector<16x1xf32> to vector<16x32xf32>
    %149 = vector.broadcast %147 : vector<1x32xf32> to vector<16x32xf32>
    %150 = arith.mulf %148, %149 : vector<16x32xf32>
    %151 = arith.addf %110, %150 : vector<16x32xf32>
    %152 = vector.extract_strided_slice %25 {offsets = [24, 0], sizes = [8, 16], strides = [1, 1]} : vector<32x16xf32> to vector<8x16xf32>
    %153 = arith.truncf %152 : vector<8x16xf32> to vector<8x16xbf16>
    %154 = vector.extract_strided_slice %29 {offsets = [24, 0], sizes = [8, 24], strides = [1, 1]} : vector<32x24xf32> to vector<8x24xf32>
    %155 = arith.truncf %154 : vector<8x24xf32> to vector<8x24xbf16>
    %cst_61 = arith.constant dense<0.000000e+00> : vector<16x24xf32>
    %156 = tpu.matmul %153, %155, %cst_61 {dimension_numbers = #tpu.dot_dimension_numbers<[0], [0], [1], [1], [0, 1, 1, 1], [], []>} : vector<8x16xbf16>, vector<8x24xbf16>, vector<16x24xf32> -> vector<16x24xf32>
    %cst_62 = arith.constant 0.353553385 : f32
    %157 = vector.broadcast %cst_62 : f32 to vector<16x24xf32>
    %158 = arith.mulf %156, %157 : vector<16x24xf32>
    %159 = vector.shape_cast %158 : vector<16x24xf32> to vector<1x16x24xf32>
    %cst_63 = arith.constant dense<0xFF800000> : vector<1xf32>
    %160 = vector.multi_reduction <maximumf>, %159, %cst_63 [1, 2] : vector<1x16x24xf32> to vector<1xf32>
    %161 = vector.shape_cast %160 : vector<1xf32> to vector<1x1x1xf32>
    %162 = vector.extract %161[0, 0, 0] : f32 from vector<1x1x1xf32>
    %163 = vector.broadcast %162 : f32 to vector<16x24xf32>
    %164 = arith.subf %158, %163 : vector<16x24xf32>
    %165 = math.exp %164 : vector<16x24xf32>
    %cst_64 = arith.constant dense<0.000000e+00> : vector<16xf32>
    %166 = vector.multi_reduction <add>, %165, %cst_64 [1] : vector<16x24xf32> to vector<16xf32>
    %167 = vector.shape_cast %166 : vector<16xf32> to vector<16x1xf32>
    %168 = tpu.reciprocal %167 {approx = true} : vector<16x1xf32> -> vector<16x1xf32>
    %cst_65 = arith.constant dense<0.000000e+00> : vector<24xf32>
    %169 = vector.multi_reduction <add>, %165, %cst_65 [0] : vector<16x24xf32> to vector<24xf32>
    %170 = vector.shape_cast %169 : vector<24xf32> to vector<1x24xf32>
    %171 = tpu.reciprocal %170 {approx = true} : vector<1x24xf32> -> vector<1x24xf32>
    %172 = vector.broadcast %171 : vector<1x24xf32> to vector<16x24xf32>
    %173 = arith.mulf %165, %172 : vector<16x24xf32>
    %cst_66 = arith.constant dense<0.000000e+00> : vector<16xf32>
    %174 = vector.multi_reduction <add>, %173, %cst_66 [1] : vector<16x24xf32> to vector<16xf32>
    %175 = vector.shape_cast %174 : vector<16xf32> to vector<16x1xf32>
    %cst_67 = arith.constant 0.020833334 : f32
    %176 = vector.broadcast %cst_67 : f32 to vector<16x1xf32>
    %177 = arith.mulf %176, %175 : vector<16x1xf32>
    %cst_68 = arith.constant 0.020833334 : f32
    %178 = vector.broadcast %cst_68 : f32 to vector<16x1xf32>
    %179 = arith.addf %178, %177 : vector<16x1xf32>
    %180 = vector.broadcast %168 : vector<16x1xf32> to vector<16x24xf32>
    %181 = arith.mulf %165, %180 : vector<16x24xf32>
    %cst_69 = arith.constant dense<0.000000e+00> : vector<24xf32>
    %182 = vector.multi_reduction <add>, %181, %cst_69 [0] : vector<16x24xf32> to vector<24xf32>
    %183 = vector.shape_cast %182 : vector<24xf32> to vector<1x24xf32>
    %cst_70 = arith.constant 3.125000e-02 : f32
    %184 = vector.broadcast %cst_70 : f32 to vector<1x24xf32>
    %185 = arith.mulf %184, %183 : vector<1x24xf32>
    %cst_71 = arith.constant 3.125000e-02 : f32
    %186 = vector.broadcast %cst_71 : f32 to vector<1x24xf32>
    %187 = arith.addf %186, %185 : vector<1x24xf32>
    %188 = vector.extract_strided_slice %6 {offsets = [3, 0], sizes = [1, 32], strides = [1, 1]} : vector<4x32xf32> to vector<1x32xf32>
    %189 = vector.broadcast %179 : vector<16x1xf32> to vector<16x32xf32>
    %190 = vector.broadcast %188 : vector<1x32xf32> to vector<16x32xf32>
    %191 = arith.mulf %189, %190 : vector<16x32xf32>
    %192 = arith.addf %151, %191 : vector<16x32xf32>
    %193 = vector.broadcast %8 : vector<1x32xf32> to vector<16x32xf32>
    %194 = arith.addf %192, %193 : vector<16x32xf32>
    %195 = arith.negf %194 : vector<16x32xf32>
    %196 = math.exp %195 : vector<16x32xf32>
    %cst_72 = arith.constant 1.000000e+00 : f32
    %197 = vector.broadcast %cst_72 : f32 to vector<16x32xf32>
    %198 = arith.addf %197, %196 : vector<16x32xf32>
    %199 = arith.divf %197, %198 : vector<16x32xf32>
    %200 = tpu.concatenate %65, %105, %146, %187 in 0 : vector<1x24xf32>, vector<1x24xf32>, vector<1x24xf32>, vector<1x24xf32> -> vector<4x24xf32>
    %cst_73 = arith.constant dense<0.000000e+00> : vector<24x32xf32>
    %201 = tpu.matmul %200, %7, %cst_73 {dimension_numbers = #tpu.dot_dimension_numbers<[0], [0], [1], [1], [0, 1, 1, 1], [], []>} : vector<4x24xf32>, vector<4x32xf32>, vector<24x32xf32> -> vector<24x32xf32>
    %202 = vector.broadcast %9 : vector<1x32xf32> to vector<24x32xf32>
    %203 = arith.addf %201, %202 : vector<24x32xf32>
    %204 = arith.negf %203 : vector<24x32xf32>
    %205 = math.exp %204 : vector<24x32xf32>
    %cst_74 = arith.constant 1.000000e+00 : f32
    %206 = vector.broadcast %cst_74 : f32 to vector<24x32xf32>
    %207 = arith.addf %206, %205 : vector<24x32xf32>
    %208 = arith.divf %206, %207 : vector<24x32xf32>
    %209 = arith.mulf %15, %199 : vector<16x32xf32>
    %210 = arith.addf %15, %209 : vector<16x32xf32>
    %211 = arith.mulf %21, %208 : vector<24x32xf32>
    %212 = arith.addf %21, %211 : vector<24x32xf32>
    %c0_75 = arith.constant 0 : index
    %c0_76 = arith.constant 0 : index
    %c0_77 = arith.constant 0 : index
    %213 = vector.load %arg14[%c0_75, %c0_76, %c0_77] : memref<2x16x32xf32, #tpu.memory_space<vmem>>, vector<1x16x32xf32>
    %214 = vector.shape_cast %213 : vector<1x16x32xf32> to vector<16x32xf32>
    %215 = vector.shape_cast %199 : vector<16x32xf32> to vector<1x16x32xf32>
    tpu.vector_store %arg14[%c0_75, %c0_76, %c0_77], %215 {strides = array<i32>} : memref<2x16x32xf32, #tpu.memory_space<vmem>>, vector<1x16x32xf32>,
    %c0_78 = arith.constant 0 : index
    %c0_79 = arith.constant 0 : index
    %c0_80 = arith.constant 0 : index
    %216 = vector.load %arg15[%c0_78, %c0_79, %c0_80] : memref<2x24x32xf32, #tpu.memory_space<vmem>>, vector<1x24x32xf32>
    %217 = vector.shape_cast %216 : vector<1x24x32xf32> to vector<24x32xf32>
    %218 = vector.shape_cast %208 : vector<24x32xf32> to vector<1x24x32xf32>
    tpu.vector_store %arg15[%c0_78, %c0_79, %c0_80], %218 {strides = array<i32>} : memref<2x24x32xf32, #tpu.memory_space<vmem>>, vector<1x24x32xf32>,
    %cst_81 = arith.constant dense<0xFF800000> : vector<32xf32>
    %219 = vector.multi_reduction <maximumf>, %210, %cst_81 [0] : vector<16x32xf32> to vector<32xf32>
    %220 = vector.shape_cast %219 : vector<32xf32> to vector<1x32xf32>
    %cst_82 = arith.constant dense<0xFF800000> : vector<32xf32>
    %221 = vector.multi_reduction <maximumf>, %212, %cst_82 [0] : vector<24x32xf32> to vector<32xf32>
    %222 = vector.shape_cast %221 : vector<32xf32> to vector<1x32xf32>
    %223 = tpu.concatenate %220, %222 in 0 : vector<1x32xf32>, vector<1x32xf32> -> vector<2x32xf32>
    %c0_83 = arith.constant 0 : index
    %c0_84 = arith.constant 0 : index
    %c0_85 = arith.constant 0 : index
    %224 = vector.load %arg13[%c0_83, %c0_84, %c0_85] : memref<2x2x32xf32, #tpu.memory_space<vmem>>, vector<1x2x32xf32>
    %225 = vector.shape_cast %224 : vector<1x2x32xf32> to vector<2x32xf32>
    %226 = vector.shape_cast %223 : vector<2x32xf32> to vector<1x2x32xf32>
    tpu.vector_store %arg13[%c0_83, %c0_84, %c0_85], %226 {strides = array<i32>} : memref<2x2x32xf32, #tpu.memory_space<vmem>>, vector<1x2x32xf32>,
    %c1 = arith.constant 1 : index
    %c0_86 = arith.constant 0 : index
    %c0_87 = arith.constant 0 : index
    %227 = vector.load %arg1[%c1, %c0_86, %c0_87] : memref<2x16x32xf32, #tpu.memory_space<vmem>>, vector<1x16x32xf32>
    %228 = vector.shape_cast %227 : vector<1x16x32xf32> to vector<16x32xf32>
    %c1_88 = arith.constant 1 : index
    %c0_89 = arith.constant 0 : index
    %c0_90 = arith.constant 0 : index
    %229 = vector.load %arg3[%c1_88, %c0_89, %c0_90] : memref<2x1x32xf32, #tpu.memory_space<vmem>>, vector<1x1x32xf32>
    %230 = vector.shape_cast %229 : vector<1x1x32xf32> to vector<1x32xf32>
    %231 = vector.broadcast %230 : vector<1x32xf32> to vector<16x32xf32>
    %232 = arith.addf %228, %231 : vector<16x32xf32>
    %c1_91 = arith.constant 1 : index
    %c0_92 = arith.constant 0 : index
    %c0_93 = arith.constant 0 : index
    %233 = vector.load %arg2[%c1_91, %c0_92, %c0_93] : memref<2x24x32xf32, #tpu.memory_space<vmem>>, vector<1x24x32xf32>
    %234 = vector.shape_cast %233 : vector<1x24x32xf32> to vector<24x32xf32>
    %c1_94 = arith.constant 1 : index
    %c0_95 = arith.constant 0 : index
    %c0_96 = arith.constant 0 : index
    %235 = vector.load %arg4[%c1_94, %c0_95, %c0_96] : memref<2x1x32xf32, #tpu.memory_space<vmem>>, vector<1x1x32xf32>
    %236 = vector.shape_cast %235 : vector<1x1x32xf32> to vector<1x32xf32>
    %237 = vector.broadcast %236 : vector<1x32xf32> to vector<24x32xf32>
    %238 = arith.addf %234, %237 : vector<24x32xf32>
    %239 = arith.truncf %232 : vector<16x32xf32> to vector<16x32xbf16>
    %cst_97 = arith.constant dense<0.000000e+00> : vector<32x16xf32>
    %240 = tpu.matmul %1, %239, %cst_97 {dimension_numbers = #tpu.dot_dimension_numbers<[1], [1], [0], [0], [0, 0, 1, 0], [], []>} : vector<32x32xbf16>, vector<16x32xbf16>, vector<32x16xf32> -> vector<32x16xf32>
    %241 = vector.broadcast %4 : vector<32x1xf32> to vector<32x16xf32>
    %242 = arith.addf %240, %241 : vector<32x16xf32>
    %243 = arith.truncf %238 : vector<24x32xf32> to vector<24x32xbf16>
    %cst_98 = arith.constant dense<0.000000e+00> : vector<32x24xf32>
    %244 = tpu.matmul %3, %243, %cst_98 {dimension_numbers = #tpu.dot_dimension_numbers<[1], [1], [0], [0], [0, 0, 1, 0], [], []>} : vector<32x32xbf16>, vector<24x32xbf16>, vector<32x24xf32> -> vector<32x24xf32>
    %245 = vector.broadcast %5 : vector<32x1xf32> to vector<32x24xf32>
    %246 = arith.addf %244, %245 : vector<32x24xf32>
    %247 = vector.extract_strided_slice %242 {offsets = [0, 0], sizes = [8, 16], strides = [1, 1]} : vector<32x16xf32> to vector<8x16xf32>
    %248 = arith.truncf %247 : vector<8x16xf32> to vector<8x16xbf16>
    %249 = vector.extract_strided_slice %246 {offsets = [0, 0], sizes = [8, 24], strides = [1, 1]} : vector<32x24xf32> to vector<8x24xf32>
    %250 = arith.truncf %249 : vector<8x24xf32> to vector<8x24xbf16>
    %cst_99 = arith.constant dense<0.000000e+00> : vector<16x24xf32>
    %251 = tpu.matmul %248, %250, %cst_99 {dimension_numbers = #tpu.dot_dimension_numbers<[0], [0], [1], [1], [0, 1, 1, 1], [], []>} : vector<8x16xbf16>, vector<8x24xbf16>, vector<16x24xf32> -> vector<16x24xf32>
    %cst_100 = arith.constant 0.353553385 : f32
    %252 = vector.broadcast %cst_100 : f32 to vector<16x24xf32>
    %253 = arith.mulf %251, %252 : vector<16x24xf32>
    %254 = vector.shape_cast %253 : vector<16x24xf32> to vector<1x16x24xf32>
    %cst_101 = arith.constant dense<0xFF800000> : vector<1xf32>
    %255 = vector.multi_reduction <maximumf>, %254, %cst_101 [1, 2] : vector<1x16x24xf32> to vector<1xf32>
    %256 = vector.shape_cast %255 : vector<1xf32> to vector<1x1x1xf32>
    %257 = vector.extract %256[0, 0, 0] : f32 from vector<1x1x1xf32>
    %258 = vector.broadcast %257 : f32 to vector<16x24xf32>
    %259 = arith.subf %253, %258 : vector<16x24xf32>
    %260 = math.exp %259 : vector<16x24xf32>
    %cst_102 = arith.constant dense<0.000000e+00> : vector<16xf32>
    %261 = vector.multi_reduction <add>, %260, %cst_102 [1] : vector<16x24xf32> to vector<16xf32>
    %262 = vector.shape_cast %261 : vector<16xf32> to vector<16x1xf32>
    %263 = tpu.reciprocal %262 {approx = true} : vector<16x1xf32> -> vector<16x1xf32>
    %cst_103 = arith.constant dense<0.000000e+00> : vector<24xf32>
    %264 = vector.multi_reduction <add>, %260, %cst_103 [0] : vector<16x24xf32> to vector<24xf32>
    %265 = vector.shape_cast %264 : vector<24xf32> to vector<1x24xf32>
    %266 = tpu.reciprocal %265 {approx = true} : vector<1x24xf32> -> vector<1x24xf32>
    %267 = vector.broadcast %266 : vector<1x24xf32> to vector<16x24xf32>
    %268 = arith.mulf %260, %267 : vector<16x24xf32>
    %cst_104 = arith.constant dense<0.000000e+00> : vector<16xf32>
    %269 = vector.multi_reduction <add>, %268, %cst_104 [1] : vector<16x24xf32> to vector<16xf32>
    %270 = vector.shape_cast %269 : vector<16xf32> to vector<16x1xf32>
    %cst_105 = arith.constant 0.020833334 : f32
    %271 = vector.broadcast %cst_105 : f32 to vector<16x1xf32>
    %272 = arith.mulf %271, %270 : vector<16x1xf32>
    %cst_106 = arith.constant 0.020833334 : f32
    %273 = vector.broadcast %cst_106 : f32 to vector<16x1xf32>
    %274 = arith.addf %273, %272 : vector<16x1xf32>
    %275 = vector.broadcast %263 : vector<16x1xf32> to vector<16x24xf32>
    %276 = arith.mulf %260, %275 : vector<16x24xf32>
    %cst_107 = arith.constant dense<0.000000e+00> : vector<24xf32>
    %277 = vector.multi_reduction <add>, %276, %cst_107 [0] : vector<16x24xf32> to vector<24xf32>
    %278 = vector.shape_cast %277 : vector<24xf32> to vector<1x24xf32>
    %cst_108 = arith.constant 3.125000e-02 : f32
    %279 = vector.broadcast %cst_108 : f32 to vector<1x24xf32>
    %280 = arith.mulf %279, %278 : vector<1x24xf32>
    %cst_109 = arith.constant 3.125000e-02 : f32
    %281 = vector.broadcast %cst_109 : f32 to vector<1x24xf32>
    %282 = arith.addf %281, %280 : vector<1x24xf32>
    %283 = vector.extract_strided_slice %6 {offsets = [0, 0], sizes = [1, 32], strides = [1, 1]} : vector<4x32xf32> to vector<1x32xf32>
    %284 = vector.broadcast %274 : vector<16x1xf32> to vector<16x32xf32>
    %285 = vector.broadcast %283 : vector<1x32xf32> to vector<16x32xf32>
    %286 = arith.mulf %284, %285 : vector<16x32xf32>
    %287 = vector.extract_strided_slice %242 {offsets = [8, 0], sizes = [8, 16], strides = [1, 1]} : vector<32x16xf32> to vector<8x16xf32>
    %288 = arith.truncf %287 : vector<8x16xf32> to vector<8x16xbf16>
    %289 = vector.extract_strided_slice %246 {offsets = [8, 0], sizes = [8, 24], strides = [1, 1]} : vector<32x24xf32> to vector<8x24xf32>
    %290 = arith.truncf %289 : vector<8x24xf32> to vector<8x24xbf16>
    %cst_110 = arith.constant dense<0.000000e+00> : vector<16x24xf32>
    %291 = tpu.matmul %288, %290, %cst_110 {dimension_numbers = #tpu.dot_dimension_numbers<[0], [0], [1], [1], [0, 1, 1, 1], [], []>} : vector<8x16xbf16>, vector<8x24xbf16>, vector<16x24xf32> -> vector<16x24xf32>
    %cst_111 = arith.constant 0.353553385 : f32
    %292 = vector.broadcast %cst_111 : f32 to vector<16x24xf32>
    %293 = arith.mulf %291, %292 : vector<16x24xf32>
    %294 = vector.shape_cast %293 : vector<16x24xf32> to vector<1x16x24xf32>
    %cst_112 = arith.constant dense<0xFF800000> : vector<1xf32>
    %295 = vector.multi_reduction <maximumf>, %294, %cst_112 [1, 2] : vector<1x16x24xf32> to vector<1xf32>
    %296 = vector.shape_cast %295 : vector<1xf32> to vector<1x1x1xf32>
    %297 = vector.extract %296[0, 0, 0] : f32 from vector<1x1x1xf32>
    %298 = vector.broadcast %297 : f32 to vector<16x24xf32>
    %299 = arith.subf %293, %298 : vector<16x24xf32>
    %300 = math.exp %299 : vector<16x24xf32>
    %cst_113 = arith.constant dense<0.000000e+00> : vector<16xf32>
    %301 = vector.multi_reduction <add>, %300, %cst_113 [1] : vector<16x24xf32> to vector<16xf32>
    %302 = vector.shape_cast %301 : vector<16xf32> to vector<16x1xf32>
    %303 = tpu.reciprocal %302 {approx = true} : vector<16x1xf32> -> vector<16x1xf32>
    %cst_114 = arith.constant dense<0.000000e+00> : vector<24xf32>
    %304 = vector.multi_reduction <add>, %300, %cst_114 [0] : vector<16x24xf32> to vector<24xf32>
    %305 = vector.shape_cast %304 : vector<24xf32> to vector<1x24xf32>
    %306 = tpu.reciprocal %305 {approx = true} : vector<1x24xf32> -> vector<1x24xf32>
    %307 = vector.broadcast %306 : vector<1x24xf32> to vector<16x24xf32>
    %308 = arith.mulf %300, %307 : vector<16x24xf32>
    %cst_115 = arith.constant dense<0.000000e+00> : vector<16xf32>
    %309 = vector.multi_reduction <add>, %308, %cst_115 [1] : vector<16x24xf32> to vector<16xf32>
    %310 = vector.shape_cast %309 : vector<16xf32> to vector<16x1xf32>
    %cst_116 = arith.constant 0.020833334 : f32
    %311 = vector.broadcast %cst_116 : f32 to vector<16x1xf32>
    %312 = arith.mulf %311, %310 : vector<16x1xf32>
    %cst_117 = arith.constant 0.020833334 : f32
    %313 = vector.broadcast %cst_117 : f32 to vector<16x1xf32>
    %314 = arith.addf %313, %312 : vector<16x1xf32>
    %315 = vector.broadcast %303 : vector<16x1xf32> to vector<16x24xf32>
    %316 = arith.mulf %300, %315 : vector<16x24xf32>
    %cst_118 = arith.constant dense<0.000000e+00> : vector<24xf32>
    %317 = vector.multi_reduction <add>, %316, %cst_118 [0] : vector<16x24xf32> to vector<24xf32>
    %318 = vector.shape_cast %317 : vector<24xf32> to vector<1x24xf32>
    %cst_119 = arith.constant 3.125000e-02 : f32
    %319 = vector.broadcast %cst_119 : f32 to vector<1x24xf32>
    %320 = arith.mulf %319, %318 : vector<1x24xf32>
    %cst_120 = arith.constant 3.125000e-02 : f32
    %321 = vector.broadcast %cst_120 : f32 to vector<1x24xf32>
    %322 = arith.addf %321, %320 : vector<1x24xf32>
    %323 = vector.extract_strided_slice %6 {offsets = [1, 0], sizes = [1, 32], strides = [1, 1]} : vector<4x32xf32> to vector<1x32xf32>
    %324 = vector.broadcast %314 : vector<16x1xf32> to vector<16x32xf32>
    %325 = vector.broadcast %323 : vector<1x32xf32> to vector<16x32xf32>
    %326 = arith.mulf %324, %325 : vector<16x32xf32>
    %327 = arith.addf %286, %326 : vector<16x32xf32>
    %328 = vector.extract_strided_slice %242 {offsets = [16, 0], sizes = [8, 16], strides = [1, 1]} : vector<32x16xf32> to vector<8x16xf32>
    %329 = arith.truncf %328 : vector<8x16xf32> to vector<8x16xbf16>
    %330 = vector.extract_strided_slice %246 {offsets = [16, 0], sizes = [8, 24], strides = [1, 1]} : vector<32x24xf32> to vector<8x24xf32>
    %331 = arith.truncf %330 : vector<8x24xf32> to vector<8x24xbf16>
    %cst_121 = arith.constant dense<0.000000e+00> : vector<16x24xf32>
    %332 = tpu.matmul %329, %331, %cst_121 {dimension_numbers = #tpu.dot_dimension_numbers<[0], [0], [1], [1], [0, 1, 1, 1], [], []>} : vector<8x16xbf16>, vector<8x24xbf16>, vector<16x24xf32> -> vector<16x24xf32>
    %cst_122 = arith.constant 0.353553385 : f32
    %333 = vector.broadcast %cst_122 : f32 to vector<16x24xf32>
    %334 = arith.mulf %332, %333 : vector<16x24xf32>
    %335 = vector.shape_cast %334 : vector<16x24xf32> to vector<1x16x24xf32>
    %cst_123 = arith.constant dense<0xFF800000> : vector<1xf32>
    %336 = vector.multi_reduction <maximumf>, %335, %cst_123 [1, 2] : vector<1x16x24xf32> to vector<1xf32>
    %337 = vector.shape_cast %336 : vector<1xf32> to vector<1x1x1xf32>
    %338 = vector.extract %337[0, 0, 0] : f32 from vector<1x1x1xf32>
    %339 = vector.broadcast %338 : f32 to vector<16x24xf32>
    %340 = arith.subf %334, %339 : vector<16x24xf32>
    %341 = math.exp %340 : vector<16x24xf32>
    %cst_124 = arith.constant dense<0.000000e+00> : vector<16xf32>
    %342 = vector.multi_reduction <add>, %341, %cst_124 [1] : vector<16x24xf32> to vector<16xf32>
    %343 = vector.shape_cast %342 : vector<16xf32> to vector<16x1xf32>
    %344 = tpu.reciprocal %343 {approx = true} : vector<16x1xf32> -> vector<16x1xf32>
    %cst_125 = arith.constant dense<0.000000e+00> : vector<24xf32>
    %345 = vector.multi_reduction <add>, %341, %cst_125 [0] : vector<16x24xf32> to vector<24xf32>
    %346 = vector.shape_cast %345 : vector<24xf32> to vector<1x24xf32>
    %347 = tpu.reciprocal %346 {approx = true} : vector<1x24xf32> -> vector<1x24xf32>
    %348 = vector.broadcast %347 : vector<1x24xf32> to vector<16x24xf32>
    %349 = arith.mulf %341, %348 : vector<16x24xf32>
    %cst_126 = arith.constant dense<0.000000e+00> : vector<16xf32>
    %350 = vector.multi_reduction <add>, %349, %cst_126 [1] : vector<16x24xf32> to vector<16xf32>
    %351 = vector.shape_cast %350 : vector<16xf32> to vector<16x1xf32>
    %cst_127 = arith.constant 0.020833334 : f32
    %352 = vector.broadcast %cst_127 : f32 to vector<16x1xf32>
    %353 = arith.mulf %352, %351 : vector<16x1xf32>
    %cst_128 = arith.constant 0.020833334 : f32
    %354 = vector.broadcast %cst_128 : f32 to vector<16x1xf32>
    %355 = arith.addf %354, %353 : vector<16x1xf32>
    %356 = vector.broadcast %344 : vector<16x1xf32> to vector<16x24xf32>
    %357 = arith.mulf %341, %356 : vector<16x24xf32>
    %cst_129 = arith.constant dense<0.000000e+00> : vector<24xf32>
    %358 = vector.multi_reduction <add>, %357, %cst_129 [0] : vector<16x24xf32> to vector<24xf32>
    %359 = vector.shape_cast %358 : vector<24xf32> to vector<1x24xf32>
    %cst_130 = arith.constant 3.125000e-02 : f32
    %360 = vector.broadcast %cst_130 : f32 to vector<1x24xf32>
    %361 = arith.mulf %360, %359 : vector<1x24xf32>
    %cst_131 = arith.constant 3.125000e-02 : f32
    %362 = vector.broadcast %cst_131 : f32 to vector<1x24xf32>
    %363 = arith.addf %362, %361 : vector<1x24xf32>
    %364 = vector.extract_strided_slice %6 {offsets = [2, 0], sizes = [1, 32], strides = [1, 1]} : vector<4x32xf32> to vector<1x32xf32>
    %365 = vector.broadcast %355 : vector<16x1xf32> to vector<16x32xf32>
    %366 = vector.broadcast %364 : vector<1x32xf32> to vector<16x32xf32>
    %367 = arith.mulf %365, %366 : vector<16x32xf32>
    %368 = arith.addf %327, %367 : vector<16x32xf32>
    %369 = vector.extract_strided_slice %242 {offsets = [24, 0], sizes = [8, 16], strides = [1, 1]} : vector<32x16xf32> to vector<8x16xf32>
    %370 = arith.truncf %369 : vector<8x16xf32> to vector<8x16xbf16>
    %371 = vector.extract_strided_slice %246 {offsets = [24, 0], sizes = [8, 24], strides = [1, 1]} : vector<32x24xf32> to vector<8x24xf32>
    %372 = arith.truncf %371 : vector<8x24xf32> to vector<8x24xbf16>
    %cst_132 = arith.constant dense<0.000000e+00> : vector<16x24xf32>
    %373 = tpu.matmul %370, %372, %cst_132 {dimension_numbers = #tpu.dot_dimension_numbers<[0], [0], [1], [1], [0, 1, 1, 1], [], []>} : vector<8x16xbf16>, vector<8x24xbf16>, vector<16x24xf32> -> vector<16x24xf32>
    %cst_133 = arith.constant 0.353553385 : f32
    %374 = vector.broadcast %cst_133 : f32 to vector<16x24xf32>
    %375 = arith.mulf %373, %374 : vector<16x24xf32>
    %376 = vector.shape_cast %375 : vector<16x24xf32> to vector<1x16x24xf32>
    %cst_134 = arith.constant dense<0xFF800000> : vector<1xf32>
    %377 = vector.multi_reduction <maximumf>, %376, %cst_134 [1, 2] : vector<1x16x24xf32> to vector<1xf32>
    %378 = vector.shape_cast %377 : vector<1xf32> to vector<1x1x1xf32>
    %379 = vector.extract %378[0, 0, 0] : f32 from vector<1x1x1xf32>
    %380 = vector.broadcast %379 : f32 to vector<16x24xf32>
    %381 = arith.subf %375, %380 : vector<16x24xf32>
    %382 = math.exp %381 : vector<16x24xf32>
    %cst_135 = arith.constant dense<0.000000e+00> : vector<16xf32>
    %383 = vector.multi_reduction <add>, %382, %cst_135 [1] : vector<16x24xf32> to vector<16xf32>
    %384 = vector.shape_cast %383 : vector<16xf32> to vector<16x1xf32>
    %385 = tpu.reciprocal %384 {approx = true} : vector<16x1xf32> -> vector<16x1xf32>
    %cst_136 = arith.constant dense<0.000000e+00> : vector<24xf32>
    %386 = vector.multi_reduction <add>, %382, %cst_136 [0] : vector<16x24xf32> to vector<24xf32>
    %387 = vector.shape_cast %386 : vector<24xf32> to vector<1x24xf32>
    %388 = tpu.reciprocal %387 {approx = true} : vector<1x24xf32> -> vector<1x24xf32>
    %389 = vector.broadcast %388 : vector<1x24xf32> to vector<16x24xf32>
    %390 = arith.mulf %382, %389 : vector<16x24xf32>
    %cst_137 = arith.constant dense<0.000000e+00> : vector<16xf32>
    %391 = vector.multi_reduction <add>, %390, %cst_137 [1] : vector<16x24xf32> to vector<16xf32>
    %392 = vector.shape_cast %391 : vector<16xf32> to vector<16x1xf32>
    %cst_138 = arith.constant 0.020833334 : f32
    %393 = vector.broadcast %cst_138 : f32 to vector<16x1xf32>
    %394 = arith.mulf %393, %392 : vector<16x1xf32>
    %cst_139 = arith.constant 0.020833334 : f32
    %395 = vector.broadcast %cst_139 : f32 to vector<16x1xf32>
    %396 = arith.addf %395, %394 : vector<16x1xf32>
    %397 = vector.broadcast %385 : vector<16x1xf32> to vector<16x24xf32>
    %398 = arith.mulf %382, %397 : vector<16x24xf32>
    %cst_140 = arith.constant dense<0.000000e+00> : vector<24xf32>
    %399 = vector.multi_reduction <add>, %398, %cst_140 [0] : vector<16x24xf32> to vector<24xf32>
    %400 = vector.shape_cast %399 : vector<24xf32> to vector<1x24xf32>
    %cst_141 = arith.constant 3.125000e-02 : f32
    %401 = vector.broadcast %cst_141 : f32 to vector<1x24xf32>
    %402 = arith.mulf %401, %400 : vector<1x24xf32>
    %cst_142 = arith.constant 3.125000e-02 : f32
    %403 = vector.broadcast %cst_142 : f32 to vector<1x24xf32>
    %404 = arith.addf %403, %402 : vector<1x24xf32>
    %405 = vector.extract_strided_slice %6 {offsets = [3, 0], sizes = [1, 32], strides = [1, 1]} : vector<4x32xf32> to vector<1x32xf32>
    %406 = vector.broadcast %396 : vector<16x1xf32> to vector<16x32xf32>
    %407 = vector.broadcast %405 : vector<1x32xf32> to vector<16x32xf32>
    %408 = arith.mulf %406, %407 : vector<16x32xf32>
    %409 = arith.addf %368, %408 : vector<16x32xf32>
    %410 = vector.broadcast %8 : vector<1x32xf32> to vector<16x32xf32>
    %411 = arith.addf %409, %410 : vector<16x32xf32>
    %412 = arith.negf %411 : vector<16x32xf32>
    %413 = math.exp %412 : vector<16x32xf32>
    %cst_143 = arith.constant 1.000000e+00 : f32
    %414 = vector.broadcast %cst_143 : f32 to vector<16x32xf32>
    %415 = arith.addf %414, %413 : vector<16x32xf32>
    %416 = arith.divf %414, %415 : vector<16x32xf32>
    %417 = tpu.concatenate %282, %322, %363, %404 in 0 : vector<1x24xf32>, vector<1x24xf32>, vector<1x24xf32>, vector<1x24xf32> -> vector<4x24xf32>
    %cst_144 = arith.constant dense<0.000000e+00> : vector<24x32xf32>
    %418 = tpu.matmul %417, %7, %cst_144 {dimension_numbers = #tpu.dot_dimension_numbers<[0], [0], [1], [1], [0, 1, 1, 1], [], []>} : vector<4x24xf32>, vector<4x32xf32>, vector<24x32xf32> -> vector<24x32xf32>
    %419 = vector.broadcast %9 : vector<1x32xf32> to vector<24x32xf32>
    %420 = arith.addf %418, %419 : vector<24x32xf32>
    %421 = arith.negf %420 : vector<24x32xf32>
    %422 = math.exp %421 : vector<24x32xf32>
    %cst_145 = arith.constant 1.000000e+00 : f32
    %423 = vector.broadcast %cst_145 : f32 to vector<24x32xf32>
    %424 = arith.addf %423, %422 : vector<24x32xf32>
    %425 = arith.divf %423, %424 : vector<24x32xf32>
    %426 = arith.mulf %232, %416 : vector<16x32xf32>
    %427 = arith.addf %232, %426 : vector<16x32xf32>
    %428 = arith.mulf %238, %425 : vector<24x32xf32>
    %429 = arith.addf %238, %428 : vector<24x32xf32>
    %c1_146 = arith.constant 1 : index
    %c0_147 = arith.constant 0 : index
    %c0_148 = arith.constant 0 : index
    %430 = vector.load %arg14[%c1_146, %c0_147, %c0_148] : memref<2x16x32xf32, #tpu.memory_space<vmem>>, vector<1x16x32xf32>
    %431 = vector.shape_cast %430 : vector<1x16x32xf32> to vector<16x32xf32>
    %432 = vector.shape_cast %416 : vector<16x32xf32> to vector<1x16x32xf32>
    tpu.vector_store %arg14[%c1_146, %c0_147, %c0_148], %432 {strides = array<i32>} : memref<2x16x32xf32, #tpu.memory_space<vmem>>, vector<1x16x32xf32>,
    %c1_149 = arith.constant 1 : index
    %c0_150 = arith.constant 0 : index
    %c0_151 = arith.constant 0 : index
    %433 = vector.load %arg15[%c1_149, %c0_150, %c0_151] : memref<2x24x32xf32, #tpu.memory_space<vmem>>, vector<1x24x32xf32>
    %434 = vector.shape_cast %433 : vector<1x24x32xf32> to vector<24x32xf32>
    %435 = vector.shape_cast %425 : vector<24x32xf32> to vector<1x24x32xf32>
    tpu.vector_store %arg15[%c1_149, %c0_150, %c0_151], %435 {strides = array<i32>} : memref<2x24x32xf32, #tpu.memory_space<vmem>>, vector<1x24x32xf32>,
    %cst_152 = arith.constant dense<0xFF800000> : vector<32xf32>
    %436 = vector.multi_reduction <maximumf>, %427, %cst_152 [0] : vector<16x32xf32> to vector<32xf32>
    %437 = vector.shape_cast %436 : vector<32xf32> to vector<1x32xf32>
    %cst_153 = arith.constant dense<0xFF800000> : vector<32xf32>
    %438 = vector.multi_reduction <maximumf>, %429, %cst_153 [0] : vector<24x32xf32> to vector<32xf32>
    %439 = vector.shape_cast %438 : vector<32xf32> to vector<1x32xf32>
    %440 = tpu.concatenate %437, %439 in 0 : vector<1x32xf32>, vector<1x32xf32> -> vector<2x32xf32>
    %c1_154 = arith.constant 1 : index
    %c0_155 = arith.constant 0 : index
    %c0_156 = arith.constant 0 : index
    %441 = vector.load %arg13[%c1_154, %c0_155, %c0_156] : memref<2x2x32xf32, #tpu.memory_space<vmem>>, vector<1x2x32xf32>
    %442 = vector.shape_cast %441 : vector<1x2x32xf32> to vector<2x32xf32>
    %443 = vector.shape_cast %440 : vector<2x32xf32> to vector<1x2x32xf32>
    tpu.vector_store %arg13[%c1_154, %c0_155, %c0_156], %443 {strides = array<i32>} : memref<2x2x32xf32, #tpu.memory_space<vmem>>, vector<1x2x32xf32>,
    return
  }
  func.func @transform_0(%arg0: i32) -> (i32, i32, i32) {
    %c0_i32 = arith.constant 0 : i32
    %c0_i32_0 = arith.constant 0 : i32
    %c0_i32_1 = arith.constant 0 : i32
    return %arg0, %c0_i32, %c0_i32_0 : i32, i32, i32
  }
  func.func @transform_1(%arg0: i32) -> (i32, i32, i32) {
    %c0_i32 = arith.constant 0 : i32
    %c0_i32_0 = arith.constant 0 : i32
    %c0_i32_1 = arith.constant 0 : i32
    return %arg0, %c0_i32, %c0_i32_0 : i32, i32, i32
  }
  func.func @transform_2(%arg0: i32) -> (i32, i32, i32) {
    %c0_i32 = arith.constant 0 : i32
    %c0_i32_0 = arith.constant 0 : i32
    %c0_i32_1 = arith.constant 0 : i32
    return %arg0, %c0_i32, %c0_i32_0 : i32, i32, i32
  }
  func.func @transform_3(%arg0: i32) -> (i32, i32, i32) {
    %c0_i32 = arith.constant 0 : i32
    %c0_i32_0 = arith.constant 0 : i32
    %c0_i32_1 = arith.constant 0 : i32
    return %arg0, %c0_i32, %c0_i32_0 : i32, i32, i32
  }
  func.func @transform_4(%arg0: i32) -> (i32, i32) {
    %c0_i32 = arith.constant 0 : i32
    %c0_i32_0 = arith.constant 0 : i32
    %c0_i32_1 = arith.constant 0 : i32
    return %c0_i32, %c0_i32_0 : i32, i32
  }
  func.func @transform_5(%arg0: i32) -> (i32, i32) {
    %c0_i32 = arith.constant 0 : i32
    %c0_i32_0 = arith.constant 0 : i32
    %c0_i32_1 = arith.constant 0 : i32
    return %c0_i32, %c0_i32_0 : i32, i32
  }
  func.func @transform_6(%arg0: i32) -> (i32, i32) {
    %c0_i32 = arith.constant 0 : i32
    %c0_i32_0 = arith.constant 0 : i32
    %c0_i32_1 = arith.constant 0 : i32
    return %c0_i32, %c0_i32_0 : i32, i32
  }
  func.func @transform_7(%arg0: i32) -> (i32, i32) {
    %c0_i32 = arith.constant 0 : i32
    %c0_i32_0 = arith.constant 0 : i32
    %c0_i32_1 = arith.constant 0 : i32
    return %c0_i32, %c0_i32_0 : i32, i32
  }
  func.func @transform_8(%arg0: i32) -> (i32, i32) {
    %c0_i32 = arith.constant 0 : i32
    %c0_i32_0 = arith.constant 0 : i32
    %c0_i32_1 = arith.constant 0 : i32
    return %c0_i32, %c0_i32_0 : i32, i32
  }
  func.func @transform_9(%arg0: i32) -> (i32, i32) {
    %c0_i32 = arith.constant 0 : i32
    %c0_i32_0 = arith.constant 0 : i32
    %c0_i32_1 = arith.constant 0 : i32
    return %c0_i32, %c0_i32_0 : i32, i32
  }
  func.func @transform_10(%arg0: i32) -> (i32, i32) {
    %c0_i32 = arith.constant 0 : i32
    %c0_i32_0 = arith.constant 0 : i32
    %c0_i32_1 = arith.constant 0 : i32
    return %c0_i32, %c0_i32_0 : i32, i32
  }
  func.func @transform_11(%arg0: i32) -> (i32, i32) {
    %c0_i32 = arith.constant 0 : i32
    %c0_i32_0 = arith.constant 0 : i32
    %c0_i32_1 = arith.constant 0 : i32
    return %c0_i32, %c0_i32_0 : i32, i32
  }
  func.func @transform_12(%arg0: i32) -> (i32, i32, i32) {
    %c0_i32 = arith.constant 0 : i32
    %c0_i32_0 = arith.constant 0 : i32
    %c0_i32_1 = arith.constant 0 : i32
    return %arg0, %c0_i32, %c0_i32_0 : i32, i32, i32
  }
  func.func @transform_13(%arg0: i32) -> (i32, i32, i32) {
    %c0_i32 = arith.constant 0 : i32
    %c0_i32_0 = arith.constant 0 : i32
    %c0_i32_1 = arith.constant 0 : i32
    return %arg0, %c0_i32, %c0_i32_0 : i32, i32, i32
  }
  func.func @transform_14(%arg0: i32) -> (i32, i32, i32) {
    %c0_i32 = arith.constant 0 : i32
    %c0_i32_0 = arith.constant 0 : i32
    %c0_i32_1 = arith.constant 0 : i32
    return %arg0, %c0_i32, %c0_i32_0 : i32, i32, i32
  }
}

</mosaic_0001>

<bundles_post_ra>
// kernel: tpu_custom_call.1
= control target key start
LH: loop header
LB: loop body
LE: loop exit
PB: predicated region body
PF: predicated region fallthrough
CT: control target
= control target key end

     0   :  { %s3904_s0 = inlined_call_operand.vmem [shape: f32[4,16,32], index: 0, kind: input, shape index: {}]   ;;  %s3905_s1 = inlined_call_operand.hbm [shape: f32[4,24,32], index: 1, kind: input, shape index: {}]   ;;  %s3906_s2 = inlined_call_operand.hbm [shape: f32[4,1,32], index: 2, kind: input, shape index: {}]   ;;  %s3907_s3 = inlined_call_operand.hbm [shape: f32[4,1,32], index: 3, kind: input, shape index: {}]   ;;  %s3908_s4 = inlined_call_operand.hbm [shape: f32[32,32], index: 4, kind: input, shape index: {}]   ;;  %s3909_s5 = inlined_call_operand.vmem [shape: f32[32,1], index: 5, kind: input, shape index: {}]   ;;  %s3910_s6 = inlined_call_operand.hbm [shape: f32[32,32], index: 6, kind: input, shape index: {}]   ;;  %s3911_s7 = inlined_call_operand.vmem [shape: f32[32,1], index: 7, kind: input, shape index: {}]   ;;  %s3912_s8 = inlined_call_operand.vmem [shape: f32[4,32], index: 8, kind: input, shape index: {}]   ;;  %s3913_s9 = inlined_call_operand.vmem [shape: f32[1,32], index: 9, kind: input, shape index: {}]   ;;  %s3914_s10 = inlined_call_operand.vmem [shape: f32[4,32], index: 10, kind: input, shape index: {}]   ;;  %s3915_s11 = inlined_call_operand.vmem [shape: f32[1,32], index: 11, kind: input, shape index: {}]   ;;  %s3916_s12 = inlined_call_operand.hbm [shape: f32[4,2,32], index: 12, kind: output, shape index: {0}]   ;;  %s3917_s13 = inlined_call_operand.hbm [shape: f32[4,16,32], index: 13, kind: output, shape index: {1}]   ;;  %s3918_s14 = inlined_call_operand.hbm [shape: f32[4,24,32], index: 14, kind: output, shape index: {2}]  }
   0x1   :  { %3939 = sst [smem:[#allocation26_spill]] %s3906_s2 }
   0x2   :  { %3940 = sst [smem:[#allocation27_spill]] %s3908_s4 }
   0x3   :  { %3941 = sst [smem:[#allocation28_spill]] %s3911_s7 }
   0x4   :  { %3942 = sst [smem:[#allocation29_spill]] %s3912_s8 }
   0x5   :  { %3943 = sst [smem:[#allocation30_spill]] %s3913_s9 }
   0x6   :  { %3944 = sst [smem:[#allocation31_spill]] %s3914_s10 }
   0x7   :  { %3945 = sst [smem:[#allocation32_spill]] %s3915_s11 }
   0x8   :  { %3946 = sst [smem:[#allocation33_spill]] %s3916_s12 }
   0x9   :  { %3947 = sst [smem:[#allocation34_spill]] %s3917_s13 }
   0xa   :  { %3948 = sst [smem:[#allocation35_spill]] %s3918_s14 }
   0xb   :  { %20 = vsyncpa [#allocation3], 0 }
   0xc   :  { %22 = vsyncpa [#allocation3 + $0x1], 0 }
   0xd   :  { %23 = vsyncpa [#allocation6], 0 }
   0xe   :  { %25 = vsyncpa [#allocation6 + $0x1], 0 }
   0xf   :  { %26 = vsyncpa [#allocation9], 0 }
  0x10   :  { %27 = vsyncpa [#allocation4], 0 }
  0x11   :  { %29 = vsyncpa [#allocation4 + $0x1], 0 }
  0x12   :  { %30 = vsyncpa [#allocation13], 0 }
  0x13   :  { %32 = vsyncpa [#allocation13 + $0x1], 0  ;;  %s3117_s29 = smov 0   ;;  %s3119_s30 = smov 0  }
  0x14   :  { %s3121_s15 = smov 0   ;;  %s3123_s16 = smov 0  }
  0x15 LB: > { %3949 = sst [smem:[#allocation20_spill]] %s3017_s29  ;;  %s3138_s17 = sadd.s32 4294967295, %s3029_s16   ;;  %s3029_s16 = sphi %s3123_s16, %s3982_s16   ;;  %s3025_s15 = sphi %s3121_s15, %s3984_s15   ;;  %s3021_s30 = sphi %s3119_s30, %s3986_s30   ;;  %s3017_s29 = sphi %s3117_s29, %s3985_s29  }
  0x16   : > { %3950 = sst [smem:[#allocation21_spill]] %s3025_s15  ;;  %s3919_s18 = sadd.s32 4294967294, %s3029_s16  }
  0x17   : > { %p84_p0 = scmp.ne.s32.totalorder %s3021_s30, %s3017_s29  ;;  %p3935_p1 = scmp.eq.s32.totalorder %s3138_s17, 0 }
  0x18   : > { %p328_p2 = scmp.eq.s32.totalorder %s3138_s17, 1  ;;  %p334_p3 = scmp.eq.s32.totalorder %s3919_s18, 1 }
  0x19   : > { %p3149_p4 = por %p3935_p1, %p84_p0  ;;  %p2401_p5 = scmp.ge.s32.totalorder %s3029_s16, 1 }
  0x1a   : > { %p3154_p6 = por %p334_p3, %p84_p0  ;;  %p393_p7 = scmp.lt.s32.totalorder %s3029_s16, 3 }
  0x1b   : > { %s3954_s4 = sld [smem:[#allocation27_spill]]  ;;  %s3031_s25 = smov [#allocation8]  }
  0x1c   : > { %s3952_s20 = scalar_select %p3154_p6, 1, 0 }
  0x1d   : > { %p3162_p8 = pnand %p2401_p5, %p393_p7  ;;  %s406_s26 = sshll.u32 %s3031_s25, 4  ;;  %s407_s26 = int_to_ptr.vmem [resolvable:$true] %s406_s26 }
  0x1e   : > { %3953 = sst [smem:[#allocation22_spill]] %s3952_s20  ;;  %s3176_s28 = sadd.s32 1, %s3029_s16  }
  0x1f   : > { %p2526_p9 = pneg %p3162_p8  ;;  %3957 = sst [smem:[#allocation23_spill]] %s3176_s28 }
  0x20   : > { %s3923_s21 = smov 128   ;;  %s3925_s22 = smov 8  }
  0x21   : > { %s404_s23 = sshll.u32 %s3954_s4, 4  ;;  %p3170_p10 = pnand %p2526_p9, %p3935_p1  ;;  %s405_s23 = int_to_ptr.hbm [resolvable:$true] %s404_s23 }
  0x22   : > { %s68_s25 = ssub.s32 %s3029_s16, %s3176_s28  ;;  %s71_s18 = sadd.s32 1, %s3025_s15 }
  0x23   : > { %2529 = dma.hbm_to_vmem [thread:$0]  (!%p3170_p10), %s405_s23, 512, %s407_s26, [#allocation9], %s3923_s21, %s3923_s21, %s3925_s22  }
  0x24   : > { %p69_p12 = scmp.eq.s32.totalorder %s68_s25, 0  ;;  %p78_p13 = scmp.ne.s32.totalorder %s3025_s15, %s3021_s30 }
  0x25   : > { %p79_p0 = scmp.eq.s32.totalorder %s3029_s16, 0  ;;  %p2555_p3 = scmp.lt.s32.totalorder %s3029_s16, 2 }
  0x26   : > { %s3191_s4 = scalar_select %p69_p12, %s3025_s15, %s71_s18  }
  0x27   : > { %p80_p5 = por %p79_p0, %p78_p13  ;;  %p3195_p7 = por %p328_p2, %p78_p13 }
  0x28   : > { %3958 = sst [smem:[#allocation24_spill]] %s3191_s4  ;;  %s3200_s29 = sand.u32 1, %s3025_s15  }
  0x29   : > { %s3959_s20 = scalar_select %p3195_p7, 1, 0 }
  0x2a   : > { %s485_s12 = sand.u32 1, %s3029_s16   ;;  %p3203_p9 = pnand %p2555_p3, %p80_p5 }
  0x2b   : > { %3960 = sst [smem:[#allocation25_spill]] %s3959_s20  ;;  %s3934_s26 = sshll.u32 %s3200_s29, 1 }
  0x2c   : > { %s2409_s18 = sshll.u32 %s3029_s16, 1  ;;  %s3962_s2 = sld [smem:[#allocation26_spill]] }
  0x2d   : > { %s489_s4 = scalar_lea.vmem [#allocation5], %s3934_s26  ;;  %s3214_s14 = scalar_lea.sflag [#allocation6], %s485_s12 }
  0x2e   : > { %s496_s28 = sshll.u32 %s489_s4, 4  ;;  %p2779_p12 = pneg %p3203_p9  ;;  %s497_s28 = int_to_ptr.vmem [resolvable:$true] %s496_s28 }
  0x32   : > { %s493_s22 = scalar_lea.hbm %s3962_s2, %s2409_s18  ;;  %s2782_s26 = scalar_lea.hbm %s3962_s2, 4 }
  0x33   : > { %s494_s15 = sshll.u32 %s493_s22, 4  ;;  %s495_s15 = int_to_ptr.hbm [resolvable:$true] %s494_s15 }
  0x34   : > { %s2775_s13 = sshra.s32 %s495_s15, 4  ;;  %s2776_s13 = int_to_ptr.hbm [resolvable:$true] %s2775_s13 }
  0x35   : > { %s2777_s20 = scalar_lea.hbm %s2776_s13, 2  ;;  %p2783_p3 = scmp.lt.s32.totalorder %s2776_s13, %s3962_s2 }
  0x36   : > { %p2778_p2 = scmp.ne.s32.totalorder %s2776_s13, %s2777_s20  ;;  %p2784_p5 = scmp.lt.s32.totalorder %s2782_s26, %s2777_s20 }
  0x38   : > { %p2780_p13 = pnand %p2779_p12, %p2778_p2  ;;  %p2785_p11 = por %p2784_p5, %p2783_p3 }
  0x3a   : > { %p2781_p0 = pneg %p2780_p13 }
  0x3c   : > { %p2786_p1 = pnand %p2785_p11, %p2781_p0 }
  0x3e   : > { %2789 = shalt.err (!%p2786_p1)
}
  0x3f   : > { %s3938_s12 = smov 16   ;;  %s3035_s9 = smov 1  }
  0x40   : > { %2539 = dma.hbm_to_vmem [thread:$0]  (!%p3203_p9), %s495_s15, 32, %s497_s28, %s3214_s14, %s3938_s12, %s3938_s12, %s3035_s9  }
  0x41   : > { %s514_s13 = scalar_lea.hbm %s3907_s3, %s2409_s18  ;;  %s3963_s20 = sshll.u32 %s3200_s29, 1 }
  0x42   : > { %s510_s26 = scalar_lea.vmem [#allocation7], %s3963_s20  ;;  %s515_s22 = sshll.u32 %s514_s13, 4  ;;  %s3253_s22 = int_to_ptr.hbm [resolvable:$true] %s515_s22 }
  0x43   : > { %s517_s4 = sshll.u32 %s510_s26, 4  ;;  %s421_s11 = sshll.u32 %s3910_s6, 4  ;;  %s422_s11 = int_to_ptr.hbm [resolvable:$true] %s421_s11  ;;  %s3241_s4 = int_to_ptr.vmem [resolvable:$true] %s517_s4 }
  0x44   : > { %s3036_s10 = smov [#allocation10]   ;;  %s2486_s15 = smul.u32 48, %s3200_s29 }
  0x45   : > { %s423_s7 = sshll.u32 %s3036_s10, 4  ;;  %s3964_s28 = smov 8   ;;  %s424_s7 = int_to_ptr.vmem [resolvable:$true] %s423_s7 }
  0x46   : > { %s3965_s18 = smov 128   ;;  %s2487_s21 = smul.u32 48, %s3029_s16 }
  0x47   : > { %2532 = dma.hbm_to_vmem [thread:$0]  (!%p3170_p10), %s422_s11, 512, %s424_s7, [#allocation9], %s3965_s18, %s3965_s18, %s3964_s28  }
  0x48   : > { %s466_s25 = scalar_lea.vmem [#allocation2], %s2486_s15  ;;  %s472_s8 = scalar_lea.hbm %s3905_s1, %s2487_s21 }
  0x49   : > { %s475_s13 = sshll.u32 %s466_s25, 4  ;;  %s473_s26 = sshll.u32 %s472_s8, 4  ;;  %s476_s13 = int_to_ptr.vmem [resolvable:$true] %s475_s13  ;;  %s474_s26 = int_to_ptr.hbm [resolvable:$true] %s473_s26 }
  0x4a   : > { %s463_s10 = scalar_lea.sflag [#allocation3], %s3200_s29  ;;  %s2835_s12 = sshra.s32 %s474_s26, 4  ;;  %s2836_s12 = int_to_ptr.hbm [resolvable:$true] %s2835_s12 }
  0x4b   : > { %s2837_s27 = scalar_lea.hbm %s2836_s12, 48  ;;  %s2842_s15 = scalar_lea.hbm %s3905_s1, 96 }
  0x4c   : > { %p2838_p1 = scmp.ne.s32.totalorder %s2836_s12, %s2837_s27  ;;  %p2843_p2 = scmp.lt.s32.totalorder %s2836_s12, %s3905_s1 }
  0x4d   : > { %p2844_p13 = scmp.lt.s32.totalorder %s2842_s15, %s2837_s27 }
  0x4e   : > { %p2840_p10 = pnand %p2838_p1, %p2779_p12 }
  0x4f   : > { %p2845_p0 = por %p2844_p13, %p2843_p2 }
  0x50   : > { %p2841_p11 = pneg %p2840_p10 }
  0x52   : > { %p2846_p3 = pnand %p2845_p0, %p2841_p11 }
  0x54   : > { %2849 = shalt.err (!%p2846_p3)
}
  0x55   : > { %2536 = dma.hbm_to_vmem [thread:$0]  (!%p3203_p9), %s474_s26, 768, %s476_s13, %s463_s10, %s3965_s18, %s3965_s18, %s3964_s28  }
  0x56   : > { %s2865_s29 = sshra.s32 %s3253_s22, 4  ;;  %s2872_s8 = scalar_lea.hbm %s3907_s3, 4  ;;  %s2866_s29 = int_to_ptr.hbm [resolvable:$true] %s2865_s29 }
  0x57   : > { %s2867_s20 = scalar_lea.hbm %s2866_s29, 2  ;;  %p2873_p11 = scmp.lt.s32.totalorder %s2866_s29, %s3907_s3 }
  0x58   : > { %p2868_p5 = scmp.ne.s32.totalorder %s2866_s29, %s2867_s20  ;;  %p2874_p2 = scmp.lt.s32.totalorder %s2872_s8, %s2867_s20 }
  0x5a   : > { %p2870_p1 = pnand %p2868_p5, %p2779_p12  ;;  %p2875_p13 = por %p2874_p2, %p2873_p11 }
  0x5c   : > { %p2871_p10 = pneg %p2870_p1 }
  0x5e   : > { %p2876_p0 = pnand %p2875_p13, %p2871_p10 }
  0x60   : > { %2879 = shalt.err (!%p2876_p0)
}
  0x61   : > { %s3966_s28 = smov 16   ;;  %529 = sbr.rel (%p3162_p8) target bundleno = 2015 (0x7df), region = 68 }
  0x62   : > { %2542 = dma.hbm_to_vmem [thread:$0]  (!%p3203_p9), %s3253_s22, 32, %s3241_s4, %s3214_s14, %s3966_s28, %s3966_s28, %s3035_s9  }
  0x63   : > { %s3291_s18 = sand.u32 (!%p3162_p8), 1, %s3021_s30  }
  0x64   : > { %s2488_s13 = smul.u32 (!%p3162_p8), 48, %s3291_s18  ;;  %s532_s26 = scalar_lea.sflag (!%p3162_p8), [#allocation3], %s3291_s18 }
  0x66   : > { %s3297_s23 = scalar_lea.vmem [#allocation2], %s2488_s13 }
  0x67   : > { %2996 = dma.done.wait (%p3149_p4), %s532_s26, 768  }
  0x68   : > { %2998 = vsyncadd (%p3149_p4), %s532_s26, 4294966528  ;;  %s541_s9 = sand.u32 1, %s3138_s17   ;;  %s2413_s14 = sshll.u32 %s3291_s18, 1 }
  0x69   : > { %s542_s24 = scalar_lea.sflag [#allocation6], %s541_s9  ;;  %s3307_s4 = scalar_lea.vmem [#allocation5], %s2413_s14 }
  0x6a   : > { %3000 = dma.done.wait (%p3149_p4), %s542_s24, 64  }
  0x6b   : > { %3002 = vsyncadd (%p3149_p4), %s542_s24, 4294967232  ;;  %s3313_s22 = scalar_lea.vmem [#allocation7], %s2413_s14  ;;  %p3967_p8 = scmp.eq.s32.totalorder %s3138_s17, 0 }
  0x6d   : > { %3004 = dma.done.wait (%p3967_p8), [#allocation9], 1024   ;;  %p3968_p9 = pmov %p3967_p8 }
  0x6e   : > { %s2419_s10 = sshll.u32 %s3138_s17, 1  ;;  %v3037_v0 = vmov 0   ;;  %v2618_v3 = vld [vmem:[%s3307_s4] ss:$0 sm:$0xff]  ;;  %v2619_v5 = vld [vmem:[%s3313_s22] ss:$0 sm:$0xff] }
  0x6f   : > { %3006 = vsyncadd (%p3968_p9), [#allocation9], 4294966272  ;;  %p638_p12 = scmp.lt.s32.totalorder %s2419_s10, 3  ;;  %2603 = vset.pattern.permute.xlu0 %v3037_v0  ;;  %2604 = vset.pattern.permute.xlu1 %v3037_v0  ;;  %v685_v4 = vld [vmem:[%s3297_s23 + $0x10] sm:$0xff]  ;;  %v683_v9 = vld [vmem:[%s3297_s23] sm:$0xff]  ;;  %vm714_vm0 = vcmask 261120  }
  0x70   : > { %2605 = vset.pattern.permute.xlu2 %v3037_v0  ;;  %v663_v6 = vld [vmem:[%s3909_s5] sm:$0xff]  ;;  %v684_v10 = vld [vmem:[%s3297_s23 + $0x8] sm:$0xff]  ;;  %v3339_v11 = vadd.f32 %v2619_v5, %v685_v4  ;;  %v665_v13 = vld [vmem:[%s3909_s5 + $0x10] sm:$0xff]  ;;  %v3348_v15 = vadd.f32 %v2619_v5, %v683_v9  ;;  %vm818_vm1 = vcmask 1043456   ;;  %s3970_s29 = sld [smem:[#allocation31_spill]]  ;;  %vm814_vm2 = vcmask 64512  }
  0x71   : > { %s3988_s10 = smov (!%p638_p12, %s2419_s10), 3  ;;  %696 = vperm.xlu0 %2603, %v663_v6   ;;  %v3350_v16 = vadd.f32 %v2619_v5, %v684_v10  ;;  %706 = vperm.xlu1 %2604, %v665_v13   ;;  %v2444_v17 = vld [vmem:[%s3297_s23 + $0x28] sm:$0xff]  ;;  %v652_v20 = vld [vmem:[#allocation8 + $0x8] sm:$0xff]  ;;  %v2620_v21 = vld [vmem:[%s3313_s22 + $0x1] ss:$0 sm:$0xff]  ;;  %vm838_vm3 = vcmask 195584  }
  0x72   : > { %s2481_s19 = sshll.u32 %s3988_s10, 4  ;;  %v744_v14 = vpack.c.bf16 %v3339_v11, %v3339_v11  ;;  %v651_v19 = vld [vmem:[#allocation8] sm:$0xff]  ;;  %v2443_v25 = vld [vmem:[%s3297_s23 + $0x20] sm:$0xff]  ;;  %v3361_v26 = vadd.f32 %v2620_v21, %v2444_v17  ;;  %v666_v30 = vld [vmem:[%s3909_s5 + $0x18] sm:$0xff]  ;;  %vm1260_vm4 = vcmask 1040384   ;;  %vm1262_vm5 = vcmask 1041408  }
  0x73   : > { %s3323_s25 = scalar_lea.vmem %s3904_s0, %s2481_s19  ;;  %v664_v23 = vld [vmem:[%s3909_s5 + $0x8] sm:$0xff]  ;;  %v743_v27 = vpack.c.bf16 %v3350_v16, %v3348_v15  ;;  %v3365_v28 = vpack.c.bf16 %v652_v20, %v651_v19  ;;  %v3374_v32 = vadd.f32 %v2620_v21, %v2443_v25  ;;  %v658_v38 = vld [vmem:[#allocation10 + $0x8] sm:$0xff]  ;;  %v653_v42 = vld [vmem:[#allocation8 + $0x10] sm:$0xff]  ;;  %vm1264_vm6 = vcmask 1042432   ;;  %s3971_s7 = sld [smem:[#allocation32_spill]] }
  0x74   : > { %v675_v1 = vld [vmem:[%s3323_s25] sm:$0xff]  ;;  %v676_v2 = vld [vmem:[%s3323_s25 + $0x8] sm:$0xff]  ;;  %v775_v22 = vsel %vm714_vm0, %v744_v14, 0  ;;  %v1481_v29 = vpack.c.bf16 %v3361_v26, %v3361_v26  ;;  %v659_v46 = vld [vmem:[#allocation10 + $0x10] sm:$0xff]  ;;  %vm1301_vm7 = vcmask 31744   ;;  %s3628_s28 = scalar_lea.vmem [#allocation14], %s2488_s13 }
  0x75   : > { %v3333_v7 = vadd.f32 %v2618_v3, %v675_v1  ;;  %v3335_v8 = vadd.f32 %v2618_v3, %v676_v2  ;;  %v2442_v24 = vld [vmem:[%s3297_s23 + $0x18] sm:$0xff]  ;;  %783 = vmatpush.bf16.xpose.msra.mxu1 %v775_v22  ;;  %v772_v34 = vsel %vm714_vm0, %v743_v27, 0  ;;  %s3969_s23 = sld [smem:[#allocation28_spill]]  ;;  %v654_v43 = vld [vmem:[#allocation8 + $0x18] sm:$0xff]  ;;  %s2418_s19 = sshll.u32 %s3291_s18, 5 }
  0x76   : > { %v3372_v31 = vadd.f32 %v2620_v21, %v2442_v24  ;;  %v1486_v33 = vsel %vm714_vm0, %v1481_v29, 0  ;;  %v657_v37 = vld [vmem:[#allocation10] sm:$0xff]  ;;  %v3390_v44 = vpack.c.bf16 %v654_v43, %v653_v42  ;;  %v660_v47 = vld [vmem:[#allocation10 + $0x18] sm:$0xff]  ;;  %v2439_v42 = vld [vmem:[%s3323_s25 + $0x10] sm:$0xff]  ;;  %s3972_s14 = sld [smem:[#allocation29_spill]]  ;;  %s3697_s11 = scalar_lea.vmem [#allocation12], %s2418_s19 }
  0x77   : > { %v693_v12 = vpack.c.bf16 %v3335_v8, %v3333_v7  ;;  %v661_v41 = vpack.c.bf16 %v658_v38, %v657_v37  ;;  %v662_v48 = vpack.c.bf16 %v660_v47, %v659_v46  ;;  %v2440_v43 = vld [vmem:[%s3323_s25 + $0x18] sm:$0xff]  ;;  %s3973_s10 = sld [smem:[#allocation30_spill]]  ;;  %s2169_s26 = sshll.u32 %s3697_s11, 4  ;;  %s2170_s26 = int_to_ptr.vmem [resolvable:$true] %s2169_s26 }
  0x78   : > { %v1480_v35 = vpack.c.bf16 %v3374_v32, %v3372_v31  ;;  %s3975_s27 = sld [smem:[#allocation34_spill]]  ;;  %s3810_s24 = scalar_lea.sflag [#allocation13], %s541_s9 }
  0x79   : > { %v722_v18 = vsel %vm714_vm0, %v693_v12, 0  ;;  %701 = vperm.xlu0 %2603, %v664_v23   ;;  %711 = vperm.xlu1 %2604, %v666_v30  }
  0x7a   : > { %731 = vmatpush.bf16.xpose.msra.mxu0 %v722_v18  ;;  %v1483_v39 = vsel %vm714_vm0, %v1480_v35, 0 }
  0x7b   : > { %v669_v36 = vld [vmem:[%s3969_s23 + $0x10] sm:$0xff]  ;;  %v670_v40 = vld [vmem:[%s3969_s23 + $0x18] sm:$0xff]  ;;  %v667_v45 = vld [vmem:[%s3969_s23] sm:$0xff] }
  0x7c   : > { %747 = vperm.xlu2 %2605, %v667_v45   ;;  %v668_v49 = vld [vmem:[%s3969_s23 + $0x8] sm:$0xff] }
  0x7d   : > { %784 = vmatpush.bf16.xpose.msra.mxu1 %v772_v34 }
  0x81   : > { %2422 = vmatmul.msk.bf16.vlgmr.msra.gmra.mxu0 %vm714_vm0, %v3365_v28  ;;  %757 = vperm.xlu0 %2603, %v669_v36  }
  0x82   : > { %1494 = vmatpush.bf16.xpose.msrb.mxu0 %v1486_v33  ;;  %762 = vperm.xlu1 %2604, %v670_v40   ;;  %v3424_v40 = vld [vmem:[%s3970_s29] sm:$0xf] }
  0x84   : > { %2424 = vmatmul.msk.bf16.vlgmr.msra.gmra.mxu1 %vm714_vm0, %v661_v41  ;;  %752 = vperm.xlu2 %2605, %v668_v49  }
  0x8a   : > { %1495 = vmatpush.bf16.xpose.msrb.mxu0 %v1483_v39 }
  0x91   : > { %2423 = vmatmul.msk.bf16.gmra.mxu0 %vm714_vm0, %v3390_v44 }
  0x92   : > { %2456 = vmatpush.msk.msra.mxu0 %vm818_vm1, %v3424_v40 }
  0x94   : > { %2425 = vmatmul.msk.bf16.gmra.mxu1 %vm714_vm0, %v662_v48 }
  0xa1   : > { %2448 = vmatmul.msk.bf16.vlgmr.msrb.gmra.mxu0 %vm714_vm0, %v661_v41  ;;  %v2621_v41 = vld [vmem:[%s3307_s4 + $0x1] ss:$0 sm:$0xff] }
  0xa2   : > { %v3431_v45 = vadd.f32 %v2621_v41, %v2439_v42  ;;  %v3433_v46 = vadd.f32 %v2621_v41, %v2440_v43 }
  0xb1   : > { %2449 = vmatmul.msk.bf16.gmra.mxu0 %vm714_vm0, %v662_v48  ;;  %v1457_v48 = vpack.c.bf16 %v3433_v46, %v3431_v45 }
  0xb3   : > { %v1459_v49 = vsel %vm714_vm0, %v1457_v48, 0 }
  0xd6   : > { %v748_v52 = vpop.permute.xlu2 %747 }
  0xde   : > { %v753_v0 = vpop.permute.xlu2 %752 }
  0xe3   : > { %v3403_v50 = vpop.permute.xlu0 %696  ;;  %v3409_v62 = vpop.permute.xlu1 %706 }
  0xeb   : > { %v3406_v54 = vpop.permute.xlu0 %701  ;;  %v3413_v6 = vpop.permute.xlu1 %711 }
  0xf3   : > { %v758_v12 = vpop.permute.xlu0 %757 }
  0xf4   : > { %v763_v23 = vpop.permute.xlu1 %762 }
  0xfe   : > { %v733_v51 = vpop.f32.mrf.mxu0 }
  0xff   : > { %v734_v53 = vadd.f32 %v733_v51, %v3403_v50 }
 0x101   : > { %v786_v57 = vpop.f32.mrf.mxu1  ;;  %v796_v59 = vpack.c.bf16 %v734_v53, %v734_v53 }
 0x102   : > { %v787_v58 = vadd.f32 %v786_v57, %v748_v52 }
 0x104   : > { %v797_v61 = vpack.c.bf16 %v787_v58, %v787_v58 }
 0x106   : > { %v735_v55 = vpop.f32.mrf.mxu0  ;;  %v820_v63 = vsel %vm818_vm1, %v797_v61, 0 }
 0x107   : > { %v736_v56 = vadd.f32 %v735_v55, %v3406_v54  ;;  %829 = vmatpush.bf16.msra.mxu2 %v820_v63 }
 0x109   : > { %v902_v60 = vpack.c.bf16 %v736_v56, %v736_v56  ;;  %v788_v2 = vpop.f32.mrf.mxu1 }
 0x10a   : > { %v789_v3 = vadd.f32 %v788_v2, %v753_v0 }
 0x10b   : > { %2606 = vxpose.binary.xlu2.c.b16.start.end [1/2] (short) (narrow) %v902_v60, %v796_v59, 16 }
 0x10c   : > { %v903_v4 = vpack.c.bf16 %v789_v3, %v789_v3 }
 0x10e   : > { %v738_v1 = vpop.f32.mrf.mxu0  ;;  %v924_v5 = vsel %vm818_vm1, %v903_v4, 0 }
 0x10f   : > { %v739_v9 = vadd.f32 %v738_v1, %v3409_v62  ;;  %933 = vmatpush.bf16.msra.mxu3 %v924_v5 }
 0x111   : > { %v791_v14 = vpop.f32.mrf.mxu1  ;;  %v1007_v18 = vpack.c.bf16 %v739_v9, %v739_v9 }
 0x112   : > { %v792_v17 = vadd.f32 %v791_v14, %v758_v12 }
 0x114   : > { %v1008_v20 = vpack.c.bf16 %v792_v17, %v792_v17 }
 0x116   : > { %v740_v10 = vpop.f32.mrf.mxu0  ;;  %v1029_v21 = vsel %vm818_vm1, %v1008_v20, 0 }
 0x117   : > { %v741_v13 = vadd.f32 %v740_v10, %v3413_v6  ;;  %1038 = vmatpush.bf16.msrb.mxu2 %v1029_v21 }
 0x119   : > { %v1112_v19 = vpack.c.bf16 %v741_v13, %v741_v13  ;;  %v793_v24 = vpop.f32.mrf.mxu1 }
 0x11a   : > { %v794_v27 = vadd.f32 %v793_v24, %v763_v23 }
 0x11b   : > { %2609 = vxpose.binary.xlu0.c.b16.start.end [1/2] (short) (narrow) %v1112_v19, %v1007_v18, 16 }
 0x11c   : > { %v1113_v30 = vpack.c.bf16 %v794_v27, %v794_v27 }
 0x11e   : > { %v1497_v22 = vpop.f32.mrf.mxu0  ;;  %v1134_v34 = vsel %vm818_vm1, %v1113_v30, 0 }
 0x11f   : > { %v1498_v25 = vadd.f32 %v1497_v22, %v748_v52  ;;  %1143 = vmatpush.bf16.msrb.mxu3 %v1134_v34 }
 0x121   : > { %v1508_v29 = vpack.c.bf16 %v1498_v25, %v1498_v25 }
 0x123   : > { %v1529_v33 = vsel %vm818_vm1, %v1508_v29, 0 }
 0x124   : > { %1538 = vmatpush.bf16.msrb.mxu1 %v1529_v33 }
 0x126   : > { %v1499_v35 = vpop.f32.mrf.mxu0 }
 0x127   : > { %v1500_v52 = vadd.f32 %v1499_v35, %v753_v0 }
 0x129   : > { %v1610_v53 = vpack.c.bf16 %v1500_v52, %v1500_v52 }
 0x12b   : > { %v1631_v57 = vsel %vm818_vm1, %v1610_v53, 0 }
 0x12e   : > { %v1502_v36 = vpop.f32.mrf.mxu0 }
 0x12f   : > { %v1503_v37 = vadd.f32 %v1502_v36, %v758_v12 }
 0x131   : > { %v1714_v38 = vpack.c.bf16 %v1503_v37, %v1503_v37 }
 0x133   : > { %v1735_v39 = vsel %vm818_vm1, %v1714_v38, 0 }
 0x134   : > { %1744 = vmatpush.bf16.msra.mxu1 %v1735_v39 }
 0x136   : > { %v1504_v55 = vpop.f32.mrf.mxu0 }
 0x137   : > { %v1505_v58 = vadd.f32 %v1504_v55, %v763_v23 }
 0x139   : > { %v1818_v59 = vpack.c.bf16 %v1505_v58, %v1505_v58 }
 0x13b   : > { %v1839_v61 = vsel %vm818_vm1, %v1818_v59, 0 }
 0x1ac   : > { %v2607_v47 = vpop.trf.xlu2 }
 0x1ad   : > { %2426 = vmatmul.msk.bf16.vlgmr.msra.gmra.mxu2 %vm814_vm2, %v2607_v47 }
 0x1ae   : > { %2432 = vmatpush.msk.msra.mxu2 %vm818_vm1, %v3424_v40 }
 0x1b4   : > { %v2608_v51 = vpop.trf.xlu2 }
 0x1b5   : > { %2427 = vmatmul.msk.bf16.vlgmr.msra.gmra.mxu3 %vm814_vm2, %v2608_v51 }
 0x1b6   : > { %1468 = vmatpush.bf16.xpose.msra.mxu3 %v1459_v49 }
 0x1c7   : > { %v2610_v56 = vpop.trf.xlu0 }
 0x1c8   : > { %2428 = vmatmul.msk.bf16.vlgmr.msrb.gmra.mxu2 %vm814_vm2, %v2610_v56 }
 0x1c9   : > { %1640 = vmatpush.bf16.msrb.mxu2 %v1631_v57 }
 0x1cf   : > { %v2611_v60 = vpop.trf.xlu0 }
 0x1d0   : > { %2429 = vmatmul.msk.bf16.vlgmr.msrb.gmra.mxu3 %vm814_vm2, %v2611_v60 }
 0x1d1   : > { %1848 = vmatpush.bf16.msrb.mxu3 %v1839_v61 }
 0x1e0   : > { %2446 = vmatmul.msk.bf16.vlgmr.msra.gmra.mxu3 %vm714_vm0, %v3365_v28 }
 0x1f0   : > { %2447 = vmatmul.msk.bf16.gmra.mxu3 %vm714_vm0, %v3390_v44 }
 0x230   : > { %v831_v63 = vpop.f32.mrf.mxu2 }
 0x231   : > { %v3450_v0 = vmul.f32 0.35355338, %v831_v63 }
 0x233   : > { %v839_v4 = vsel %vm838_vm3, %v3450_v0, -inf }
 0x238   : > { %v833_v1 = vpop.f32.mrf.mxu2  ;;  %v935_v2 = vpop.f32.mrf.mxu3 }
 0x239   : > { %v3452_v3 = vmul.f32 0.35355338, %v833_v1  ;;  %v3458_v10 = vmul.f32 0.35355338, %v935_v2 }
 0x23b   : > { %v840_v5 = vsel %vm838_vm3, %v3452_v3, -inf  ;;  %v942_v12 = vsel %vm838_vm3, %v3458_v10, -inf }
 0x23c   : > { %v841_v9 = vmax.f32 %v839_v4, %v840_v5 }
 0x23e   : > { %842 = vmax.xlane.f32.xlu1 %v841_v9 }
 0x240   : > { %v937_v28 = vpop.f32.mrf.mxu3 }
 0x241   : > { %v3460_v44 = vmul.f32 0.35355338, %v937_v28 }
 0x243   : > { %v943_v13 = vsel %vm838_vm3, %v3460_v44, -inf }
 0x244   : > { %v944_v14 = vmax.f32 %v942_v12, %v943_v13 }
 0x246   : > { %945 = vmax.xlane.f32.xlu2 %v944_v14 }
 0x24b   : > { %v1040_v17 = vpop.f32.mrf.mxu2 }
 0x24c   : > { %v3466_v18 = vmul.f32 0.35355338, %v1040_v17 }
 0x24e   : > { %v1047_v22 = vsel %vm838_vm3, %v3466_v18, -inf }
 0x253   : > { %v1042_v19 = vpop.f32.mrf.mxu2  ;;  %v1145_v20 = vpop.f32.mrf.mxu3 }
 0x254   : > { %v3468_v21 = vmul.f32 0.35355338, %v1042_v19  ;;  %v3474_v25 = vmul.f32 0.35355338, %v1145_v20 }
 0x256   : > { %v1048_v23 = vsel %vm838_vm3, %v3468_v21, -inf  ;;  %v1152_v30 = vsel %vm838_vm3, %v3474_v25, -inf }
 0x257   : > { %v1049_v24 = vmax.f32 %v1047_v22, %v1048_v23 }
 0x259   : > { %1050 = vmax.xlane.f32.xlu0 %v1049_v24 }
 0x25b   : > { %v1147_v27 = vpop.f32.mrf.mxu3 }
 0x25c   : > { %v3476_v29 = vmul.f32 0.35355338, %v1147_v27 }
 0x25e   : > { %v1153_v33 = vsel %vm838_vm3, %v3476_v29, -inf }
 0x25f   : > { %v1154_v34 = vmax.f32 %v1152_v30, %v1153_v33 }
 0x261   : > { %1155 = vmax.xlane.f32.xlu1 %v1154_v34 }
 0x263   : > { %v1470_v35 = vpop.f32.mrf.mxu3 }
 0x264   : > { %v1471_v36 = vadd.f32 %v1470_v35, %v3403_v50 }
 0x266   : > { %v1507_v39 = vpack.c.bf16 %v1471_v36, %v1471_v36 }
 0x26b   : > { %v1472_v37 = vpop.f32.mrf.mxu3 }
 0x26c   : > { %v1473_v38 = vadd.f32 %v1472_v37, %v3406_v54 }
 0x26e   : > { %v1609_v41 = vpack.c.bf16 %v1473_v38, %v1473_v38 }
 0x270   : > { %2612 = vxpose.binary.xlu2.c.b16.start.end [1/2] (short) (narrow) %v1609_v41, %v1507_v39, 16 }
 0x273   : > { %v1475_v42 = vpop.f32.mrf.mxu3 }
 0x274   : > { %v1476_v47 = vadd.f32 %v1475_v42, %v3409_v62 }
 0x276   : > { %v1713_v49 = vpack.c.bf16 %v1476_v47, %v1476_v47 }
 0x27b   : > { %v1477_v43 = vpop.f32.mrf.mxu3 }
 0x27c   : > { %v1478_v48 = vadd.f32 %v1477_v43, %v3413_v6 }
 0x27e   : > { %v1817_v51 = vpack.c.bf16 %v1478_v48, %v1478_v48 }
 0x282   : > { %2615 = vxpose.binary.xlu0.c.b16.start.end [1/2] (short) (narrow) %v1713_v49, %v1817_v51, 16 }
 0x2b1   : > { %v843_v52 = vpop.xlane.xlu1 %842 }
 0x2b2   : > { %v844_v53 = vrot.slane %v843_v52, 4 }
 0x2b4   : > { %v845_v55 = vmax.f32 %v843_v52, %v844_v53 }
 0x2b6   : > { %v846_v56 = vrot.slane %v845_v55, 2 }
 0x2b8   : > { %v847_v50 = vmax.f32 %v845_v55, %v846_v56 }
 0x2b9   : > { %v946_v57 = vpop.xlane.xlu2 %945 }
 0x2ba   : > { %v947_v58 = vrot.slane %v946_v57, 4  ;;  %v848_v54 = vrot.slane %v847_v50, 1 }
 0x2bc   : > { %v948_v59 = vmax.f32 %v946_v57, %v947_v58  ;;  %v849_v60 = vmax.f32 %v847_v50, %v848_v54 }
 0x2be   : > { %v949_v61 = vrot.slane %v948_v59, 2  ;;  %2489 = vpush %v849_v60 }
 0x2c0   : > { %v950_v63 = vmax.f32 %v948_v59, %v949_v61 }
 0x2c2   : > { %v951_v1 = vrot.slane %v950_v63, 1 }
 0x2c4   : > { %v952_v62 = vmax.f32 %v950_v63, %v951_v1 }
 0x2c6   : > { %2491 = vpush %v952_v62 }
 0x2cc   : > { %v1051_v6 = vpop.xlane.xlu0 %1050 }
 0x2cd   : > { %v1052_v2 = vrot.slane %v1051_v6, 4 }
 0x2cf   : > { %v1053_v4 = vmax.f32 %v1051_v6, %v1052_v2 }
 0x2d1   : > { %v1054_v5 = vrot.slane %v1053_v4, 2 }
 0x2d3   : > { %v1055_v9 = vmax.f32 %v1053_v4, %v1054_v5 }
 0x2d4   : > { %v1156_v28 = vpop.xlane.xlu1 %1155 }
 0x2d5   : > { %v1157_v12 = vrot.slane %v1156_v28, 4  ;;  %v1056_v13 = vrot.slane %v1055_v9, 1 }
 0x2d7   : > { %v1158_v14 = vmax.f32 %v1156_v28, %v1157_v12  ;;  %v1057_v17 = vmax.f32 %v1055_v9, %v1056_v13 }
 0x2d9   : > { %v1159_v19 = vrot.slane %v1158_v14, 2  ;;  %2493 = vpush %v1057_v17 }
 0x2db   : > { %v1160_v20 = vmax.f32 %v1158_v14, %v1159_v19 }
 0x2dd   : > { %v1161_v22 = vrot.slane %v1160_v20, 1 }
 0x2df   : > { %v1162_v23 = vmax.f32 %v1160_v20, %v1161_v22 }
 0x2e1   : > { %2495 = vpush %v1162_v23 }
 0x2ef   : > { %s2490_s4 = spop %2489 }
 0x2f0   : > { %v851_v24 = vstv %s2490_s4  ;;  %s2417_s4 = sshll.u32 %s3291_s18, 2 }
 0x2f1   : > { %v852_v27 = vsub.f32 %v3450_v0, %v851_v24  ;;  %v853_v30 = vsub.f32 %v3452_v3, %v851_v24 }
 0x2f3   : > { %v854_v33 = vmul.f32 1.442695, %v852_v27  ;;  %v856_v34 = vmul.f32 1.442695, %v853_v30 }
 0x2f5   : > { %2624 = vpow2.f32 %v854_v33 }
 0x2f6   : > { %2626 = vpow2.f32 %v856_v34 }
 0x2f7   : > { %s2492_s25 = spop %2491 }
 0x2f8   : > { %v954_v35 = vstv %s2492_s25  ;;  %s3743_s25 = scalar_lea.vmem [#allocation11], %s2417_s4 }
 0x2f9   : > { %v955_v36 = vsub.f32 %v3458_v10, %v954_v35  ;;  %v956_v37 = vsub.f32 %v3460_v44, %v954_v35 }
 0x2fb   : > { %v3490_v38 = vpop.eup %2624  ;;  %v957_v39 = vmul.f32 1.442695, %v955_v36  ;;  %v959_v41 = vmul.f32 1.442695, %v956_v37 }
 0x2fc   : > { %v3492_v42 = vpop.eup %2626  ;;  %v858_v0 = vsel %vm838_vm3, %v3490_v38, 0.0 }
 0x2fd   : > { %2628 = vpow2.f32 %v957_v39  ;;  %859 = vadd.xlane.f32.xlu1 %v858_v0  ;;  %v861_v3 = vsel %vm838_vm3, %v3492_v42, 0.0 }
 0x2fe   : > { %2630 = vpow2.f32 %v959_v41  ;;  %v3498_v43 = vadd.f32 %v861_v3, %v858_v0 }
 0x303   : > { %v3500_v10 = vpop.eup %2628 }
 0x304   : > { %v3502_v44 = vpop.eup %2630  ;;  %v961_v47 = vsel %vm838_vm3, %v3500_v10, 0.0 }
 0x305   : > { %862 = vadd.xlane.f32.xlu1 %v861_v3  ;;  %v964_v48 = vsel %vm838_vm3, %v3502_v44, 0.0 }
 0x306   : > { %v3508_v49 = vadd.f32 %v964_v48, %v961_v47 }
 0x30a   : > { %s2494_s20 = spop %2493 }
 0x30b   : > { %v1059_v51 = vstv %s2494_s20 }
 0x30c   : > { %v1060_v52 = vsub.f32 %v3466_v18, %v1059_v51  ;;  %v1061_v53 = vsub.f32 %v3468_v21, %v1059_v51 }
 0x30d   : > { %962 = vadd.xlane.f32.xlu1 %v961_v47 }
 0x30e   : > { %v1062_v55 = vmul.f32 1.442695, %v1060_v52  ;;  %v1064_v56 = vmul.f32 1.442695, %v1061_v53 }
 0x310   : > { %2632 = vpow2.f32 %v1062_v55 }
 0x311   : > { %2634 = vpow2.f32 %v1064_v56  ;;  %v2613_v50 = vpop.trf.xlu2 }
 0x312   : > { %s2496_s12 = spop %2495  ;;  %2450 = vmatmul.msk.bf16.vlgmr.msrb.gmra.mxu1 %vm814_vm2, %v2613_v50 }
 0x313   : > { %v1164_v57 = vstv %s2496_s12  ;;  %s2484_s12 = sshll.u32 %s3138_s17, 5 }
 0x314   : > { %v1165_v58 = vsub.f32 %v3474_v25, %v1164_v57  ;;  %v1166_v54 = vsub.f32 %v3476_v29, %v1164_v57  ;;  %v970_v57 = vrot.slane %v3508_v49, 4  ;;  %s2168_s13 = scalar_lea.hbm %s3975_s27, %s2484_s12 }
 0x315   : > { %965 = vadd.xlane.f32.xlu1 %v964_v48 }
 0x316   : > { %v3515_v59 = vpop.eup %2632  ;;  %v1167_v18 = vmul.f32 1.442695, %v1165_v58  ;;  %v1169_v60 = vmul.f32 1.442695, %v1166_v54 }
 0x317   : > { %v3517_v21 = vpop.eup %2634  ;;  %v1066_v61 = vsel %vm838_vm3, %v3515_v59, 0.0 }
 0x318   : > { %2636 = vpow2.f32 %v1167_v18  ;;  %v1069_v63 = vsel %vm838_vm3, %v3517_v21, 0.0 }
 0x319   : > { %2638 = vpow2.f32 %v1169_v60  ;;  %v3523_v1 = vadd.f32 %v1069_v63, %v1066_v61  ;;  %v971_v60 = vadd.f32 %v970_v57, %v3508_v49 }
 0x31d   : > { %1067 = vadd.xlane.f32.xlu1 %v1066_v61 }
 0x31e   : > { %v3525_v25 = vpop.eup %2636 }
 0x31f   : > { %v3527_v29 = vpop.eup %2638  ;;  %v1171_v62 = vsel %vm838_vm3, %v3525_v25, 0.0 }
 0x320   : > { %v1174_v6 = vsel %vm838_vm3, %v3527_v29, 0.0 }
 0x321   : > { %v3533_v2 = vadd.f32 %v1174_v6, %v1171_v62 }
 0x325   : > { %1070 = vadd.xlane.f32.xlu1 %v1069_v63 }
 0x32d   : > { %1172 = vadd.xlane.f32.xlu1 %v1171_v62 }
 0x32e   : > { %v2616_v4 = vpop.trf.xlu0 }
 0x32f   : > { %2453 = vmatmul.msk.bf16.vlgmr.msrb.gmra.mxu3 %vm814_vm2, %v2616_v4 }
 0x335   : > { %1175 = vadd.xlane.f32.xlu1 %v1174_v6 }
 0x336   : > { %v2617_v5 = vpop.trf.xlu0 }
 0x337   : > { %2452 = vmatmul.msk.bf16.vlgmr.msra.gmra.mxu1 %vm814_vm2, %v2617_v5 }
 0x370   : > { %v860_v9 = vpop.xlane.xlu1 %859 }
 0x378   : > { %v863_v28 = vpop.xlane.xlu1 %862 }
 0x380   : > { %v963_v12 = vpop.xlane.xlu1 %962 }
 0x388   : > { %v966_v13 = vpop.xlane.xlu1 %965 }
 0x389   : > { %2640 = vrcp.f32 %v966_v13 }
 0x38a   : > { %2642 = vrcp.f32 %v863_v28  ;;  %v1180_v28 = vrot.slane %v3533_v2, 4 }
 0x38b   : > { %2644 = vrcp.f32 %v963_v12 }
 0x38c   : > { %2646 = vrcp.f32 %v860_v9  ;;  %v972_v9 = vrot.slane %v971_v60, 2  ;;  %v1181_v49 = vadd.f32 %v1180_v28, %v3533_v2 }
 0x38f   : > { %v2641_v17 = vpop.eup %2640  ;;  %v3547_v51 = vpop.f32.mrf.mxu1 }
 0x390   : > { %v1068_v14 = vpop.xlane.xlu1 %1067  ;;  %v2643_v19 = vpop.eup %2642  ;;  %v990_v22 = vmul.f32 %v2641_v17, %v3502_v44 }
 0x391   : > { %2648 = vrcp.f32 %v1068_v14  ;;  %v2645_v20 = vpop.eup %2644  ;;  %v887_v27 = vmul.f32 %v2643_v19, %v3492_v42 }
 0x392   : > { %v2647_v24 = vpop.eup %2646  ;;  %v989_v30 = vmul.f32 %v2645_v20, %v3500_v10  ;;  %v992_v35 = vsel %vm838_vm3, %v990_v22, 0.0  ;;  %v973_v20 = vadd.f32 %v972_v9, %v971_v60 }
 0x393   : > { %v886_v34 = vmul.f32 %v2647_v24, %v3490_v38  ;;  %v889_v36 = vsel %vm838_vm3, %v887_v27, 0.0 }
 0x394   : > { %v991_v37 = vsel %vm838_vm3, %v989_v30, 0.0 }
 0x395   : > { %v993_v0 = vadd.f32 %v992_v35, %v991_v37  ;;  %v888_v3 = vsel %vm838_vm3, %v886_v34, 0.0  ;;  %v974_v35 = vrot.slane %v973_v20, 1 }
 0x396   : > { %v890_v52 = vadd.f32 %v889_v36, %v888_v3  ;;  %v1182_v36 = vrot.slane %v1181_v49, 2 }
 0x397   : > { %v2649_v33 = vpop.eup %2648  ;;  %v994_v56 = vrot.slane %v993_v0, 4  ;;  %v3553_v6 = vpop.f32.mrf.mxu1 }
 0x398   : > { %v1071_v23 = vpop.xlane.xlu1 %1070  ;;  %v1094_v39 = vmul.f32 %v2649_v33, %v3515_v59  ;;  %v891_v58 = vrot.slane %v890_v52, 4  ;;  %v1183_v2 = vadd.f32 %v1182_v36, %v1181_v49 }
 0x399   : > { %2650 = vrcp.f32 %v1071_v23  ;;  %v995_v18 = vadd.f32 %v994_v56, %v993_v0 }
 0x39a   : > { %v1096_v53 = vsel %vm838_vm3, %v1094_v39, 0.0  ;;  %v892_v62 = vadd.f32 %v891_v58, %v890_v52  ;;  %v1184_v58 = vrot.slane %v1183_v2, 1 }
 0x39b   : > { %v996_v5 = vrot.slane %v995_v18, 2 }
 0x39c   : > { %v893_v13 = vrot.slane %v892_v62, 2  ;;  %v1185_v28 = vadd.f32 %v1184_v58, %v1183_v2 }
 0x39d   : > { %v997_v19 = vadd.f32 %v996_v5, %v995_v18 }
 0x39e   : > { %v894_v24 = vadd.f32 %v893_v13, %v892_v62 }
 0x39f   : > { %v2651_v41 = vpop.eup %2650  ;;  %v998_v34 = vrot.slane %v997_v19, 1 }
 0x3a0   : > { %v1095_v47 = vmul.f32 %v2651_v41, %v3517_v21  ;;  %v1173_v48 = vpop.xlane.xlu1 %1172  ;;  %v895_v0 = vrot.slane %v894_v24, 1 }
 0x3a1   : > { %2652 = vrcp.f32 %v1173_v48  ;;  %v999_v3 = vadd.f32 %v998_v34, %v997_v19  ;;  %v975_v48 = vadd.f32 %v974_v35, %v973_v20  ;;  %v867_v35 = vrot.slane %v3498_v43, 4 }
 0x3a2   : > { %v1097_v55 = vsel %vm838_vm3, %v1095_v47, 0.0 }
 0x3a3   : > { %v1098_v50 = vadd.f32 %v1097_v55, %v1096_v53  ;;  %v896_v55 = vadd.f32 %v895_v0, %v894_v24  ;;  %v868_v36 = vadd.f32 %v867_v35, %v3498_v43  ;;  %v2622_v35 = vld [vmem:[%s3971_s7] ss:$0 sm:$0xff] }
 0x3a5   : > { %v1099_v54 = vrot.slane %v1098_v50, 4 }
 0x3a7   : > { %v1100_v61 = vadd.f32 %v1099_v54, %v1098_v50  ;;  %v2653_v4 = vpop.eup %2652  ;;  %v1000_v50 = vmul.f32 0.03125, %v999_v3 }
 0x3a8   : > { %v1176_v63 = vpop.xlane.xlu1 %1175  ;;  %v1199_v14 = vmul.f32 %v2653_v4, %v3525_v25 }
 0x3a9   : > { %2654 = vrcp.f32 %v1176_v63  ;;  %v1101_v12 = vrot.slane %v1100_v61, 2  ;;  %v897_v63 = vmul.f32 0.03125, %v896_v55  ;;  %v1001_v5 = vadd.f32 0.03125, %v1000_v50 }
 0x3aa   : > { %v1201_v27 = vsel %vm838_vm3, %v1199_v14, 0.0  ;;  %2656 = vrcp.f32 %v975_v48 }
 0x3ab   : > { %v1102_v23 = vadd.f32 %v1101_v12, %v1100_v61  ;;  %v898_v14 = vadd.f32 0.03125, %v897_v63  ;;  %2658 = vrcp.f32 %v1185_v28 }
 0x3ad   : > { %v1103_v39 = vrot.slane %v1102_v23, 1  ;;  %v1261_v49 = vsel %vm1260_vm4, %v898_v14, %v1001_v5  ;;  %v2614_v14 = vpop.trf.xlu2 }
 0x3af   : > { %v2655_v17 = vpop.eup %2654  ;;  %v1104_v52 = vadd.f32 %v1103_v39, %v1102_v23  ;;  %v869_v39 = vrot.slane %v868_v36, 2 }
 0x3b0   : > { %v1200_v22 = vmul.f32 %v2655_v17, %v3527_v29  ;;  %v2657_v19 = vpop.eup %2656 }
 0x3b1   : > { %v1105_v18 = vmul.f32 0.03125, %v1104_v52  ;;  %v978_v24 = vmul.f32 %v2657_v19, %v3502_v44  ;;  %v1545_v44 = vmul.f32 0.35355338, %v3547_v51  ;;  %v870_v0 = vadd.f32 %v869_v39, %v868_v36 }
 0x3b2   : > { %v1202_v30 = vsel %vm838_vm3, %v1200_v22, 0.0 }
 0x3b3   : > { %v1203_v33 = vadd.f32 %v1202_v30, %v1201_v27  ;;  %v1106_v13 = vadd.f32 0.03125, %v1105_v18  ;;  %v982_v27 = vsel %vm838_vm3, %v978_v24, 0.0  ;;  %v3574_v30 = vpop.eup %2658  ;;  %v1547_v3 = vsel %vm838_vm3, %v1545_v44, -inf }
 0x3b4   : > { %v1746_v37 = vpop.f32.mrf.mxu1  ;;  %v871_v48 = vrot.slane %v870_v0, 1 }
 0x3b5   : > { %v1204_v41 = vrot.slane %v1203_v33, 4  ;;  %v3561_v53 = vmul.f32 0.35355338, %v1746_v37  ;;  %v1263_v22 = vsel %vm1262_vm5, %v1261_v49, %v1106_v13  ;;  %v1850_v37 = vpop.f32.mrf.mxu3 }
 0x3b6   : > { %v3586_v55 = vmul.f32 0.35355338, %v1850_v37  ;;  %v872_v43 = vadd.f32 %v871_v48, %v870_v0 }
 0x3b7   : > { %v1205_v47 = vadd.f32 %v1204_v41, %v1203_v33  ;;  %v1753_v61 = vsel %vm838_vm3, %v3561_v53, -inf  ;;  %v1187_v33 = vmul.f32 %v3574_v30, %v3525_v25  ;;  %v1546_v41 = vmul.f32 0.35355338, %v3553_v6 }
 0x3b8   : > { %v1075_v25 = vrot.slane %v3523_v1, 4  ;;  %v1857_v6 = vsel %vm838_vm3, %v3586_v55, -inf  ;;  %2660 = vrcp.f32 %v872_v43 }
 0x3b9   : > { %v1206_v56 = vrot.slane %v1205_v47, 2  ;;  %v1189_v34 = vsel %vm838_vm3, %v1187_v33, 0.0 }
 0x3ba   : > { %v1076_v50 = vadd.f32 %v1075_v25, %v3523_v1 }
 0x3bb   : > { %v1207_v57 = vadd.f32 %v1206_v56, %v1205_v47  ;;  %v1548_v47 = vsel %vm838_vm3, %v1546_v41, -inf }
 0x3bc   : > { %v1748_v54 = vpop.f32.mrf.mxu1  ;;  %v1549_v52 = vmax.f32 %v1547_v3, %v1548_v47 }
 0x3bd   : > { %v3563_v60 = vmul.f32 0.35355338, %v1748_v54  ;;  %v1208_v62 = vrot.slane %v1207_v57, 1  ;;  %v1852_v2 = vpop.f32.mrf.mxu3 }
 0x3be   : > { %v3588_v56 = vmul.f32 0.35355338, %v1852_v2  ;;  %v3595_v18 = vpop.eup %2660 }
 0x3bf   : > { %v1754_v4 = vsel %vm838_vm3, %v3563_v60, -inf  ;;  %v1209_v9 = vadd.f32 %v1208_v62, %v1207_v57  ;;  %v1077_v57 = vrot.slane %v1076_v50, 2  ;;  %v874_v63 = vmul.f32 %v3595_v18, %v3490_v38 }
 0x3c0   : > { %v1755_v12 = vmax.f32 %v1753_v61, %v1754_v4  ;;  %v1858_v51 = vsel %vm838_vm3, %v3588_v56, -inf  ;;  %v977_v4 = vmul.f32 %v2657_v19, %v3500_v10 }
 0x3c1   : > { %v1210_v17 = vmul.f32 0.03125, %v1209_v9  ;;  %v1859_v58 = vmax.f32 %v1857_v6, %v1858_v51  ;;  %v1078_v54 = vadd.f32 %v1077_v57, %v1076_v50  ;;  %v876_v1 = vsel %vm838_vm3, %v874_v63, 0.0 }
 0x3c2   : > { %1756 = vmax.xlane.f32.xlu0 %v1755_v12  ;;  %v979_v5 = vsel %vm838_vm3, %v977_v4, 0.0 }
 0x3c3   : > { %v1211_v20 = vadd.f32 0.03125, %v1210_v17  ;;  %v1079_v61 = vrot.slane %v1078_v54, 1 }
 0x3c5   : > { %v1265_v23 = vsel %vm1264_vm6, %v1263_v22, %v1211_v20  ;;  %v1080_v62 = vadd.f32 %v1079_v61, %v1078_v54 }
 0x3c6   : > { %1269 = vxpose.xlu1.b32.start.end [1/1] (short) (narrow) %v1265_v23, 24 }
 0x3c7   : > { %2662 = vrcp.f32 %v1080_v62 }
 0x3ca   : > { %983 = vadd.xlane.f32.xlu0 %v982_v27 }
 0x3cd   : > { %v3602_v9 = vpop.eup %2662 }
 0x3ce   : > { %v1083_v28 = vmul.f32 %v3602_v9, %v3517_v21 }
 0x3d0   : > { %v1087_v12 = vsel %vm838_vm3, %v1083_v28, 0.0 }
 0x3d2   : > { %1190 = vadd.xlane.f32.xlu0 %v1189_v34 }
 0x436   : > { %1550 = vmax.xlane.f32.xlu1 %v1549_v52 }
 0x43e   : > { %1860 = vmax.xlane.f32.xlu1 %v1859_v58 }
 0x446   : > { %877 = vadd.xlane.f32.xlu1 %v876_v1 }
 0x44e   : > { %980 = vadd.xlane.f32.xlu1 %v979_v5 }
 0x456   : > { %1088 = vadd.xlane.f32.xlu1 %v1087_v12 }
 0x46a   : > { %v1285_v38 = vpop.trf.xlu1 }
 0x46b   : > { %2433 = vmatmul.msk.f32.vlgmr.msra.gmra.mxu2 %vm1301_vm7, %v1285_v38 }
 0x46c   : > { %2485 = vmatpush.msk.msra.mxu2 %vm818_vm1, %v3424_v40 }
 0x472   : > { %v1286_v13 = vpop.trf.xlu1 }
 0x473   : > { %2434 = vmatmul.msk.f32.gmra.mxu2 %vm1301_vm7, %v1286_v13 }
 0x47a   : > { %v1287_v10 = vpop.trf.xlu1 }
 0x47b   : > { %2435 = vmatmul.msk.f32.gmra.mxu2 %vm1301_vm7, %v1287_v10 }
 0x483   : > { %2451 = vmatmul.msk.bf16.vlgmr.msrb.gmra.mxu2 %vm814_vm2, %v2614_v14 }
 0x4a9   : > { %v1551_v21 = vpop.xlane.xlu1 %1550 }
 0x4aa   : > { %v1552_v17 = vrot.slane %v1551_v21, 4 }
 0x4ac   : > { %v1553_v19 = vmax.f32 %v1551_v21, %v1552_v17 }
 0x4ae   : > { %v1554_v20 = vrot.slane %v1553_v19, 2 }
 0x4b0   : > { %v1555_v49 = vmax.f32 %v1553_v19, %v1554_v20 }
 0x4b2   : > { %v1556_v22 = vrot.slane %v1555_v49, 1 }
 0x4b4   : > { %v1557_v23 = vmax.f32 %v1555_v49, %v1556_v22 }
 0x4b6   : > { %2497 = vpush %v1557_v23 }
 0x4e7   : > { %s2498_s2 = spop %2497 }
 0x4e8   : > { %v1559_v24 = vstv %s2498_s2 }
 0x4e9   : > { %v1560_v40 = vsub.f32 %v1545_v44, %v1559_v24  ;;  %v1561_v27 = vsub.f32 %v1546_v41, %v1559_v24 }
 0x4eb   : > { %v1562_v33 = vmul.f32 1.442695, %v1560_v40  ;;  %v1564_v34 = vmul.f32 1.442695, %v1561_v27 }
 0x4ed   : > { %2664 = vpow2.f32 %v1562_v33 }
 0x4ee   : > { %2666 = vpow2.f32 %v1564_v34  ;;  %v1331_v36 = vpop.f32.mrf.mxu2 }
 0x4ef   : > { %v1332_v37 = vadd.f32 %v2622_v35, %v1331_v36 }
 0x4f1   : > { %v2436_v39 = vmul.f32 -1.442695, %v1332_v37 }
 0x4f3   : > { %v3616_v0 = vpop.eup %2664  ;;  %2668 = vpow2.f32 %v2436_v39 }
 0x4f4   : > { %v3618_v3 = vpop.eup %2666  ;;  %v1566_v44 = vsel %vm838_vm3, %v3616_v0, 0.0 }
 0x4f5   : > { %v1569_v41 = vsel %vm838_vm3, %v3618_v3, 0.0  ;;  %1567 = vadd.xlane.f32.xlu1 %v1566_v44 }
 0x4f6   : > { %1570 = vadd.xlane.f32.xlu0 %v1569_v41  ;;  %v1574_v47 = vadd.f32 %v1569_v41, %v1566_v44  ;;  %v1334_v48 = vpop.f32.mrf.mxu2 }
 0x4f7   : > { %v1335_v25 = vadd.f32 %v2622_v35, %v1334_v48 }
 0x4f8   : > { %v1575_v2 = vrot.slane %v1574_v47, 4 }
 0x4f9   : > { %v2669_v52 = vpop.eup %2668  ;;  %v2437_v43 = vmul.f32 -1.442695, %v1335_v25 }
 0x4fa   : > { %v1349_v50 = vadd.f32 1.0, %v2669_v52  ;;  %v1576_v51 = vadd.f32 %v1575_v2, %v1574_v47 }
 0x4fb   : > { %2670 = vpow2.f32 %v2437_v43 }
 0x4fc   : > { %2672 = vrcp.f32 %v1349_v50  ;;  %v1577_v6 = vrot.slane %v1576_v51, 2  ;;  %v1363_v38 = vand.u32 2147483648, %v1349_v50  ;;  %v1361_v14 = vand.u32 2147483647, %v1349_v50 }
 0x4fd   : > { %vm1357_vm9 = vweird.f32 %v1349_v50 }
 0x4fe   : > { %v1337_v57 = vpop.f32.mrf.mxu2  ;;  %v1578_v58 = vadd.f32 %v1577_v6, %v1576_v51  ;;  %v1364_v20 = vor.u32 1.1754944e-38, %v1363_v38  ;;  %vm1362_vm11 = vcmp.eq.f32.partialorder %v1361_v14, 8.507059e+37 }
 0x4ff   : > { %v1338_v54 = vadd.f32 %v2622_v35, %v1337_v57 }
 0x500   : > { %v1579_v63 = vrot.slane %v1578_v58, 1 }
 0x501   : > { %v2671_v61 = vpop.eup %2670  ;;  %v2438_v62 = vmul.f32 -1.442695, %v1338_v54 }
 0x502   : > { %v2673_v1 = vpop.eup %2672  ;;  %v1350_v4 = vadd.f32 1.0, %v2671_v61  ;;  %v1580_v28 = vadd.f32 %v1579_v63, %v1578_v58 }
 0x503   : > { %v1353_v5 = vmul.f32 %v2673_v1, %v1349_v50  ;;  %2674 = vpow2.f32 %v2438_v62  ;;  %vm1358_vm8 = vweird.f32 %v2673_v1 }
 0x504   : > { %2676 = vrcp.f32 %v1350_v4  ;;  %vm1359_vm10 = vmor %vm1357_vm9, %vm1358_vm8  ;;  %v1378_v34 = vand.u32 2147483648, %v1350_v4  ;;  %v1376_v39 = vand.u32 2147483647, %v1350_v4  ;;  %vm1372_vm13 = vweird.f32 %v1350_v4 }
 0x505   : > { %v1354_v12 = vsub.f32 1.0, %v1353_v5  ;;  %2678 = vrcp.f32 %v1580_v28  ;;  %v875_v5 = vmul.f32 %v3595_v18, %v3492_v42  ;;  %v1082_v18 = vmul.f32 %v3602_v9, %v3515_v59  ;;  %v1861_v59 = vpop.xlane.xlu1 %1860  ;;  %v1757_v9 = vpop.xlane.xlu0 %1756 }
 0x506   : > { %v1642_v13 = vpop.f32.mrf.mxu2  ;;  %v1379_v2 = vor.u32 1.1754944e-38, %v1378_v34  ;;  %vm1377_vm15 = vcmp.eq.f32.partialorder %v1376_v39, 8.507059e+37 }
 0x507   : > { %v1355_v10 = vmul.f32 %v2673_v1, %v1354_v12  ;;  %v3634_v35 = vmul.f32 0.35355338, %v1642_v13 }
 0x509   : > { %v2675_v21 = vpop.eup %2674  ;;  %v1356_v17 = vadd.f32 %v2673_v1, %v1355_v10  ;;  %v1649_v52 = vsel %vm838_vm3, %v3634_v35, -inf }
 0x50a   : > { %v2677_v19 = vpop.eup %2676  ;;  %v1351_v49 = vadd.f32 1.0, %v2675_v21 }
 0x50b   : > { %v3624_v22 = vpop.eup %2678  ;;  %v1360_v23 = vsel %vm1359_vm10, %v2673_v1, %v1356_v17  ;;  %v1368_v24 = vmul.f32 %v2677_v19, %v1350_v4  ;;  %vm1373_vm12 = vweird.f32 %v2677_v19 }
 0x50c   : > { %v1365_v40 = vsel %vm1362_vm11, %v1364_v20, %v1360_v23  ;;  %2680 = vrcp.f32 %v1351_v49  ;;  %v1583_v33 = vmul.f32 %v3624_v22, %v3618_v3  ;;  %vm1374_vm14 = vmor %vm1372_vm13, %vm1373_vm12  ;;  %v1393_v63 = vand.u32 2147483648, %v1351_v49 }
 0x50d   : > { %1409 = vst.msk [vmem:[%s3628_s28] sm:$0xff] %vm714_vm0, %v1365_v40  ;;  %v1369_v27 = vsub.f32 1.0, %v1368_v24  ;;  %v1401_v47 = vmul.f32 %v1365_v40, %v3348_v15  ;;  %v1391_v4 = vand.u32 2147483647, %v1351_v49  ;;  %vm1387_vm2 = vweird.f32 %v1351_v49  ;;  %v878_v34 = vpop.xlane.xlu1 %877 }
 0x50e   : > { %v1644_v36 = vpop.f32.mrf.mxu2  ;;  %v1587_v44 = vsel %vm838_vm3, %v1583_v33, 0.0  ;;  %v1394_v13 = vor.u32 1.1754944e-38, %v1393_v63  ;;  %v1084_v20 = vsel %vm838_vm3, %v1082_v18, 0.0  ;;  %v1582_v24 = vmul.f32 %v3624_v22, %v3616_v0  ;;  %v671_v63 = vld [vmem:[%s3972_s14] sm:$0xf]  ;;  %s2171_s14 = sshll.u32 %s2168_s13, 4  ;;  %s2172_s14 = int_to_ptr.hbm [resolvable:$true] %s2171_s14 }
 0x50f   : > { %v1370_v37 = vmul.f32 %v2677_v19, %v1369_v27  ;;  %1588 = vadd.xlane.f32.xlu1 %v1587_v44  ;;  %v3637_v41 = vmul.f32 0.35355338, %v1644_v36  ;;  %v1404_v58 = vadd.f32 %v1401_v47, %v3348_v15  ;;  %vm1392_vm9 = vcmp.eq.f32.partialorder %v1391_v4, 8.507059e+37  ;;  %v984_v44 = vpop.xlane.xlu0 %983  ;;  %s2909_s22 = sshra.s32 %s2172_s14, 4  ;;  %s2910_s22 = int_to_ptr.hbm [resolvable:$true] %s2909_s22 }
 0x510   : > { %v1758_v40 = vrot.slane %v1757_v9, 4  ;;  %v1862_v27 = vrot.slane %v1861_v59, 4  ;;  %p2916_p1 = scmp.lt.s32.totalorder %s2910_s22, %s3975_s27 }
 0x511   : > { %v1371_v48 = vadd.f32 %v2677_v19, %v1370_v37  ;;  %v1650_v43 = vsel %vm838_vm3, %v3637_v41, -inf  ;;  %v1421_v28 = vsel %vm714_vm0, %v1404_v58, -inf }
 0x512   : > { %v2681_v25 = vpop.eup %2680  ;;  %v1651_v6 = vmax.f32 %v1649_v52, %v1650_v43  ;;  %v1759_v33 = vmax.f32 %v1757_v9, %v1758_v40  ;;  %v1863_v36 = vmax.f32 %v1861_v59, %v1862_v27 }
 0x513   : > { %v1375_v50 = vsel %vm1374_vm14, %v2677_v19, %v1371_v48  ;;  %v1383_v51 = vmul.f32 %v2681_v25, %v1351_v49  ;;  %vm1388_vm1 = vweird.f32 %v2681_v25  ;;  %v1188_v49 = vmul.f32 %v3574_v30, %v3527_v29 }
 0x514   : > { %v1380_v57 = vsel %vm1377_vm15, %v1379_v2, %v1375_v50  ;;  %1652 = vmax.xlane.f32.xlu2 %v1651_v6  ;;  %vm1389_vm8 = vmor %vm1387_vm2, %vm1388_vm1  ;;  %v1760_v37 = vrot.slane %v1759_v33, 2  ;;  %v1864_v29 = vrot.slane %v1863_v36, 2 }
 0x515   : > { %v1402_v54 = vmul.f32 %v1380_v57, %v3350_v16  ;;  %1410 = vst.msk [vmem:[%s3628_s28 + $0x8] sm:$0xff] %vm714_vm0, %v1380_v57  ;;  %v1384_v61 = vsub.f32 1.0, %v1383_v51  ;;  %v1192_v23 = vsel %vm838_vm3, %v1188_v49, 0.0  ;;  %v981_v22 = vpop.xlane.xlu1 %980 }
 0x516   : > { %v1761_v48 = vmax.f32 %v1759_v33, %v1760_v37  ;;  %v1865_v2 = vmax.f32 %v1863_v36, %v1864_v29  ;;  %v985_v51 = vmul.f32 0.020833334, %v981_v22  ;;  %v3690_v36 = vld [vmem:[%s3973_s10] ss:$0 sm:$0xff]  ;;  %s2911_s10 = scalar_lea.hbm %s2910_s22, 32 }
 0x517   : > { %v1405_v62 = vadd.f32 %v1402_v54, %v3350_v16  ;;  %v1385_v1 = vmul.f32 %v2681_v25, %v1384_v61  ;;  %v879_v16 = vsel %vm838_vm3, %v875_v5, 0.0  ;;  %v1191_v58 = vpop.xlane.xlu0 %1190  ;;  %v882_v54 = vmul.f32 0.020833334, %v878_v34  ;;  %p2912_p4 = scmp.ne.s32.totalorder %s2910_s22, %s2911_s10 }
 0x518   : > { %v1762_v50 = vrot.slane %v1761_v48, 1  ;;  %v1866_v57 = vrot.slane %v1865_v2, 1 }
 0x519   : > { %v1422_v15 = vsel %vm714_vm0, %v1405_v62, -inf  ;;  %v1386_v12 = vadd.f32 %v2681_v25, %v1385_v1  ;;  %v987_v1 = vadd.f32 0.020833334, %v985_v51  ;;  %p2913_p3 = pnand %p2912_p4, %p3195_p7 }
 0x51a   : > { %v1424_v38 = vmax.f32 %v1421_v28, %v1422_v15  ;;  %v1763_v62 = vmax.f32 %v1761_v48, %v1762_v50  ;;  %v1867_v5 = vmax.f32 %v1865_v2, %v1866_v57  ;;  %v986_v28 = vmul.f32 0.020833334, %v984_v44 }
 0x51b   : > { %v1390_v10 = vsel %vm1389_vm8, %v2681_v25, %v1386_v12  ;;  %v1195_v15 = vmul.f32 0.020833334, %v1191_v58  ;;  %v3673_v12 = vperm.slane %v671_v63, 1  ;;  %vm1433_vm8 = vcmask 254976   ;;  %p2914_p5 = pneg %p2913_p3 }
 0x51c   : > { %v1395_v14 = vsel %vm1392_vm9, %v1394_v13, %v1390_v10  ;;  %880 = vadd.xlane.f32.xlu2 %v879_v16  ;;  %v884_v13 = vadd.f32 0.020833334, %v882_v54  ;;  %v988_v18 = vadd.f32 0.020833334, %v986_v28 }
 0x51d   : > { %v1403_v21 = vmul.f32 %v1395_v14, %v3339_v11  ;;  %1411 = vst.msk [vmem:[%s3628_s28 + $0x10] sm:$0xff] %vm714_vm0, %v1395_v14  ;;  %v1089_v10 = vpop.xlane.xlu1 %1088  ;;  %v1003_v16 = vmul.f32 %v3673_v12, %v987_v1 }
 0x51e   : > { %v1004_v27 = vmul.f32 %v3673_v12, %v988_v18 }
 0x51f   : > { %v1406_v42 = vadd.f32 %v1403_v21, %v3339_v11  ;;  %v1584_v11 = vsel %vm838_vm3, %v1582_v24, 0.0  ;;  %v1091_v24 = vmul.f32 0.020833334, %v1089_v10 }
 0x521   : > { %v1423_v17 = vsel %vm714_vm0, %v1406_v42, -inf  ;;  %v1093_v34 = vadd.f32 0.020833334, %v1091_v24 }
 0x522   : > { %v3661_v19 = vmax.f32 %v1424_v38, %v1423_v17  ;;  %v3675_v38 = vperm.slane %v671_v63, 0  ;;  %v3678_v17 = vperm.slane %v671_v63, 3 }
 0x524   : > { %1085 = vadd.xlane.f32.xlu2 %v1084_v20  ;;  %v1197_v20 = vadd.f32 0.020833334, %v1195_v15  ;;  %v900_v49 = vmul.f32 %v3675_v38, %v884_v13 }
 0x526   : > { %v1005_v59 = vadd.f32 %v1003_v16, %v900_v49  ;;  %v1213_v33 = vmul.f32 %v3678_v17, %v1197_v20 }
 0x52c   : > { %1193 = vadd.xlane.f32.xlu2 %v1192_v23  ;;  %v3681_v23 = vperm.slane %v671_v63, 2 }
 0x534   : > { %1585 = vadd.xlane.f32.xlu2 %v1584_v11 }
 0x587   : > { %v1653_v39 = vpop.xlane.xlu2 %1652 }
 0x588   : > { %v1654_v30 = vrot.slane %v1653_v39, 4 }
 0x58a   : > { %v1655_v47 = vmax.f32 %v1653_v39, %v1654_v30 }
 0x58c   : > { %v1656_v25 = vrot.slane %v1655_v47, 2 }
 0x58e   : > { %v1657_v52 = vmax.f32 %v1655_v47, %v1656_v25  ;;  %v1109_v47 = vmul.f32 %v3681_v23, %v1093_v34 }
 0x58f   : > { %v881_v43 = vpop.xlane.xlu2 %880 }
 0x590   : > { %v1658_v6 = vrot.slane %v1657_v52, 1  ;;  %v883_v4 = vmul.f32 0.020833334, %v881_v43 }
 0x592   : > { %v1659_v61 = vmax.f32 %v1657_v52, %v1658_v6  ;;  %v885_v21 = vadd.f32 0.020833334, %v883_v4 }
 0x594   : > { %2499 = vpush %v1659_v61  ;;  %v901_v9 = vmul.f32 %v3675_v38, %v885_v21 }
 0x595   : > { %2501 = vpush %v1763_v62 }
 0x596   : > { %2503 = vpush %v1867_v5  ;;  %v1006_v44 = vadd.f32 %v1004_v27, %v901_v9 }
 0x597   : > { %v1086_v14 = vpop.xlane.xlu2 %1085 }
 0x598   : > { %v1090_v42 = vmul.f32 0.020833334, %v1086_v14  ;;  %v1111_v22 = vadd.f32 %v1109_v47, %v1006_v44 }
 0x59a   : > { %v1092_v11 = vadd.f32 0.020833334, %v1090_v42 }
 0x59c   : > { %v1108_v40 = vmul.f32 %v3681_v23, %v1092_v11  ;;  %v1426_v11 = vrot.slane %v3661_v19, 4 }
 0x59e   : > { %v1110_v37 = vadd.f32 %v1108_v40, %v1005_v59 }
 0x59f   : > { %v1194_v39 = vpop.xlane.xlu2 %1193 }
 0x5a0   : > { %v1215_v29 = vadd.f32 %v1213_v33, %v1110_v37  ;;  %v1196_v30 = vmul.f32 0.020833334, %v1194_v39  ;;  %v1427_v37 = vmax.f32 %v3661_v19, %v1426_v11 }
 0x5a2   : > { %v1220_v48 = vadd.f32 %v3690_v36, %v1215_v29  ;;  %v1198_v25 = vadd.f32 0.020833334, %v1196_v30 }
 0x5a4   : > { %v2430_v2 = vmul.f32 -1.442695, %v1220_v48  ;;  %v1214_v52 = vmul.f32 %v3678_v17, %v1198_v25 }
 0x5a6   : > { %2682 = vpow2.f32 %v2430_v2  ;;  %v1216_v43 = vadd.f32 %v1214_v52, %v1111_v22 }
 0x5a8   : > { %v1221_v50 = vadd.f32 %v3690_v36, %v1216_v43 }
 0x5aa   : > { %v2431_v51 = vmul.f32 -1.442695, %v1221_v50 }
 0x5ac   : > { %v2683_v6 = vpop.eup %2682  ;;  %2684 = vpow2.f32 %v2431_v51  ;;  %v1428_v51 = vrot.slane %v1427_v37, 2 }
 0x5ad   : > { %v1228_v57 = vadd.f32 1.0, %v2683_v6 }
 0x5af   : > { %2686 = vrcp.f32 %v1228_v57  ;;  %v1241_v1 = vand.u32 2147483648, %v1228_v57  ;;  %v1239_v5 = vand.u32 2147483647, %v1228_v57  ;;  %vm1235_vm11 = vweird.f32 %v1228_v57 }
 0x5b1   : > { %v1242_v10 = vor.u32 1.1754944e-38, %v1241_v1  ;;  %vm1240_vm13 = vcmp.eq.f32.partialorder %v1239_v5, 8.507059e+37 }
 0x5b2   : > { %v2685_v58 = vpop.eup %2684 }
 0x5b3   : > { %v1229_v54 = vadd.f32 1.0, %v2685_v58 }
 0x5b5   : > { %v2687_v61 = vpop.eup %2686  ;;  %2688 = vrcp.f32 %v1229_v54  ;;  %v1256_v42 = vand.u32 2147483648, %v1229_v54  ;;  %v1254_v20 = vand.u32 2147483647, %v1229_v54  ;;  %vm1250_vm15 = vweird.f32 %v1229_v54 }
 0x5b6   : > { %v1231_v63 = vmul.f32 %v2687_v61, %v1228_v57  ;;  %vm1236_vm10 = vweird.f32 %v2687_v61 }
 0x5b7   : > { %vm1237_vm12 = vmor %vm1235_vm11, %vm1236_vm10  ;;  %v1257_v59 = vor.u32 1.1754944e-38, %v1256_v42  ;;  %vm1255_vm2 = vcmp.eq.f32.partialorder %v1254_v20, 8.507059e+37 }
 0x5b8   : > { %v1232_v62 = vsub.f32 1.0, %v1231_v63 }
 0x5ba   : > { %v1233_v4 = vmul.f32 %v2687_v61, %v1232_v62 }
 0x5bb   : > { %v2689_v28 = vpop.eup %2688 }
 0x5bc   : > { %v1234_v15 = vadd.f32 %v2687_v61, %v1233_v4  ;;  %v1246_v13 = vmul.f32 %v2689_v28, %v1229_v54  ;;  %vm1251_vm14 = vweird.f32 %v2689_v28 }
 0x5bd   : > { %vm1252_vm1 = vmor %vm1250_vm15, %vm1251_vm14 }
 0x5be   : > { %v1238_v14 = vsel %vm1237_vm12, %v2687_v61, %v1234_v15  ;;  %v1247_v16 = vsub.f32 1.0, %v1246_v13 }
 0x5bf   : > { %v1243_v21 = vsel %vm1240_vm13, %v1242_v10, %v1238_v14 }
 0x5c0   : > { %v1248_v18 = vmul.f32 %v2689_v28, %v1247_v16  ;;  %1407 = vst.msk [vmem:[%s3697_s11] sm:$0xff] %vm714_vm0, %v1243_v21  ;;  %v1397_v49 = vmul.f32 %v1243_v21, %v3333_v7 }
 0x5c2   : > { %v1249_v24 = vadd.f32 %v2689_v28, %v1248_v18  ;;  %v1399_v27 = vadd.f32 %v1397_v49, %v3333_v7 }
 0x5c4   : > { %v1253_v9 = vsel %vm1252_vm1, %v2689_v28, %v1249_v24 }
 0x5c5   : > { %v1258_v40 = vsel %vm1255_vm2, %v1257_v59, %v1253_v9  ;;  %s2500_s15 = spop %2499 }
 0x5c6   : > { %v1398_v33 = vmul.f32 %v1258_v40, %v3335_v8  ;;  %v1661_v34 = vstv %s2500_s15  ;;  %s2502_s21 = spop %2501  ;;  %1408 = vst.msk [vmem:[%s3697_s11 + $0x8] sm:$0xff] %vm714_vm0, %v1258_v40 }
 0x5c7   : > { %v1662_v39 = vsub.f32 %v3634_v35, %v1661_v34  ;;  %v1663_v44 = vsub.f32 %v3637_v41, %v1661_v34  ;;  %v1765_v29 = vstv %s2502_s21  ;;  %s2504_s29 = spop %2503  ;;  %v1412_v41 = vsel %vm714_vm0, %v1399_v27, -inf  ;;  %s2915_s21 = scalar_lea.hbm %s3975_s27, 64 }
 0x5c8   : > { %v1400_v30 = vadd.f32 %v1398_v33, %v3335_v8  ;;  %v1766_v47 = vsub.f32 %v3561_v53, %v1765_v29  ;;  %v1767_v7 = vsub.f32 %v3563_v60, %v1765_v29  ;;  %v1869_v48 = vstv %s2504_s29  ;;  %p2917_p10 = scmp.lt.s32.totalorder %s2915_s21, %s2911_s10 }
 0x5c9   : > { %v1664_v25 = vmul.f32 1.442695, %v1662_v39  ;;  %v1666_v2 = vmul.f32 1.442695, %v1663_v44  ;;  %v1870_v22 = vsub.f32 %v3586_v55, %v1869_v48  ;;  %v1871_v52 = vsub.f32 %v3588_v56, %v1869_v48 }
 0x5ca   : > { %v1413_v19 = vsel %vm714_vm0, %v1400_v30, -inf  ;;  %v1768_v35 = vmul.f32 1.442695, %v1766_v47  ;;  %v1770_v43 = vmul.f32 1.442695, %v1767_v7  ;;  %v1429_v55 = vmax.f32 %v1427_v37, %v1428_v51  ;;  %p2918_p11 = por %p2917_p10, %p2916_p1 }
 0x5cb   : > { %2690 = vpow2.f32 %v1664_v25  ;;  %v1872_v50 = vmul.f32 1.442695, %v1870_v22  ;;  %v1414_v8 = vmax.f32 %v1412_v41, %v1413_v19  ;;  %v1874_v53 = vmul.f32 1.442695, %v1871_v52 }
 0x5cc   : > { %2692 = vpow2.f32 %v1666_v2  ;;  %v1430_v1 = vrot.slane %v1429_v55, 1  ;;  %p2919_p2 = pnand %p2918_p11, %p2914_p5 }
 0x5cd   : > { %2694 = vpow2.f32 %v1768_v35  ;;  %v1415_v60 = vrot.slane %v1414_v8, 4 }
 0x5ce   : > { %2696 = vpow2.f32 %v1770_v43  ;;  %v1431_v49 = vmax.f32 %v1429_v55, %v1430_v1  ;;  %v1571_v1 = vpop.xlane.xlu0 %1570 }
 0x5cf   : > { %2698 = vpow2.f32 %v1872_v50  ;;  %v1416_v6 = vmax.f32 %v1414_v8, %v1415_v60 }
 0x5d0   : > { %2700 = vpow2.f32 %v1874_v53 }
 0x5d1   : > { %v3717_v56 = vpop.eup %2690  ;;  %v1417_v57 = vrot.slane %v1416_v6, 2 }
 0x5d2   : > { %v3719_v58 = vpop.eup %2692  ;;  %v1668_v54 = vsel %vm838_vm3, %v3717_v56, 0.0 }
 0x5d3   : > { %v3723_v61 = vpop.eup %2694  ;;  %v1671_v63 = vsel %vm838_vm3, %v3719_v58, 0.0  ;;  %1669 = vadd.xlane.f32.xlu0 %v1668_v54  ;;  %v1418_v62 = vmax.f32 %v1416_v6, %v1417_v57 }
 0x5d4   : > { %v3727_v4 = vpop.eup %2696  ;;  %1672 = vadd.xlane.f32.xlu2 %v1671_v63  ;;  %v1676_v5 = vadd.f32 %v1671_v63, %v1668_v54  ;;  %v1772_v28 = vsel %vm838_vm3, %v3723_v61, 0.0 }
 0x5d5   : > { %v3732_v15 = vpop.eup %2698  ;;  %v1775_v13 = vsel %vm838_vm3, %v3727_v4, 0.0  ;;  %v1419_v10 = vrot.slane %v1418_v62, 1 }
 0x5d6   : > { %v3736_v14 = vpop.eup %2700  ;;  %1776 = vadd.xlane.f32.xlu1 %v1775_v13  ;;  %v1677_v16 = vrot.slane %v1676_v5, 4  ;;  %v1876_v21 = vsel %vm838_vm3, %v3732_v15, 0.0  ;;  %v1780_v42 = vadd.f32 %v1775_v13, %v1772_v28  ;;  %v1586_v13 = vpop.xlane.xlu2 %1585 }
 0x5d7   : > { %v1879_v18 = vsel %vm838_vm3, %v3736_v14, 0.0  ;;  %v1420_v20 = vmax.f32 %v1418_v62, %v1419_v10  ;;  %v1568_v62 = vpop.xlane.xlu1 %1567 }
 0x5d8   : > { %v1678_v24 = vadd.f32 %v1677_v16, %v1676_v5  ;;  %v1781_v11 = vrot.slane %v1780_v42, 4  ;;  %v1884_v59 = vadd.f32 %v1879_v18, %v1876_v21 }
 0x5d9   : > { %v1432_v9 = vsel %vm1260_vm4, %v1420_v20, %v1431_v49 }
 0x5da   : > { %v1679_v40 = vrot.slane %v1678_v24, 2  ;;  %v1782_v27 = vadd.f32 %v1781_v11, %v1780_v42  ;;  %v1885_v33 = vrot.slane %v1884_v59, 4  ;;  %1434 = vst.msk [vmem:[%s3743_s25] sm:$0x3] %vm1433_vm8, %v1432_v9 }
 0x5db   : > { %1880 = vadd.xlane.f32.xlu0 %v1879_v18 }
 0x5dc   : > { %v1680_v34 = vadd.f32 %v1679_v40, %v1678_v24  ;;  %v1783_v37 = vrot.slane %v1782_v27, 2  ;;  %1773 = vadd.xlane.f32.xlu2 %v1772_v28  ;;  %v1886_v39 = vadd.f32 %v1885_v33, %v1884_v59 }
 0x5de   : > { %v1681_v44 = vrot.slane %v1680_v34, 1  ;;  %1877 = vadd.xlane.f32.xlu1 %v1876_v21  ;;  %v1784_v29 = vadd.f32 %v1783_v37, %v1782_v27  ;;  %v1887_v30 = vrot.slane %v1886_v39, 2 }
 0x5df   : > { %v1589_v21 = vpop.xlane.xlu1 %1588 }
 0x5e0   : > { %v1682_v47 = vadd.f32 %v1681_v44, %v1680_v34  ;;  %v1785_v7 = vrot.slane %v1784_v29, 1  ;;  %v1888_v48 = vadd.f32 %v1887_v30, %v1886_v39 }
 0x5e2   : > { %2702 = vrcp.f32 %v1682_v47  ;;  %v1786_v25 = vadd.f32 %v1785_v7, %v1784_v29  ;;  %v1889_v2 = vrot.slane %v1888_v48, 1 }
 0x5e4   : > { %2704 = vrcp.f32 %v1786_v25  ;;  %v1890_v22 = vadd.f32 %v1889_v2, %v1888_v48 }
 0x5e6   : > { %2706 = vrcp.f32 %v1890_v22 }
 0x5e7   : > { %2708 = vrcp.f32 %v1568_v62 }
 0x5e8   : > { %v2703_v52 = vpop.eup %2702  ;;  %2710 = vrcp.f32 %v1571_v1 }
 0x5e9   : > { %v1685_v19 = vmul.f32 %v2703_v52, %v3719_v58  ;;  %v1684_v35 = vmul.f32 %v2703_v52, %v3717_v56 }
 0x5ea   : > { %v2705_v43 = vpop.eup %2704 }
 0x5eb   : > { %v1789_v41 = vmul.f32 %v2705_v43, %v3727_v4  ;;  %v1689_v50 = vsel %vm838_vm3, %v1685_v19, 0.0  ;;  %v1686_v8 = vsel %vm838_vm3, %v1684_v35, 0.0  ;;  %v1788_v60 = vmul.f32 %v2705_v43, %v3723_v61 }
 0x5ec   : > { %v2707_v51 = vpop.eup %2706  ;;  %1690 = vadd.xlane.f32.xlu0 %v1689_v50  ;;  %1687 = vadd.xlane.f32.xlu1 %v1686_v8 }
 0x5ed   : > { %v1793_v53 = vsel %vm838_vm3, %v1789_v41, 0.0  ;;  %v1893_v6 = vmul.f32 %v2707_v51, %v3736_v14  ;;  %v1892_v55 = vmul.f32 %v2707_v51, %v3732_v15  ;;  %v1790_v57 = vsel %vm838_vm3, %v1788_v60, 0.0  ;;  %v2709_v5 = vpop.eup %2708 }
 0x5ee   : > { %1794 = vadd.xlane.f32.xlu2 %v1793_v53  ;;  %v2711_v28 = vpop.eup %2710  ;;  %v1594_v16 = vmul.f32 %v2709_v5, %v3616_v0 }
 0x5ef   : > { %v1897_v54 = vsel %vm838_vm3, %v1893_v6, 0.0  ;;  %v1894_v63 = vsel %vm838_vm3, %v1892_v55, 0.0  ;;  %v1595_v10 = vmul.f32 %v2711_v28, %v3618_v3 }
 0x5f0   : > { %v1596_v18 = vsel %vm838_vm3, %v1594_v16, 0.0  ;;  %v1590_v16 = vmul.f32 0.020833334, %v1586_v13 }
 0x5f1   : > { %v1597_v42 = vsel %vm838_vm3, %v1595_v10, 0.0 }
 0x5f2   : > { %v1598_v24 = vadd.f32 %v1597_v42, %v1596_v18 }
 0x5f4   : > { %1791 = vadd.xlane.f32.xlu0 %v1790_v57  ;;  %1898 = vadd.xlane.f32.xlu1 %v1897_v54  ;;  %v1599_v59 = vrot.slane %v1598_v24, 4 }
 0x5f6   : > { %1895 = vadd.xlane.f32.xlu2 %v1894_v63  ;;  %v1600_v34 = vadd.f32 %v1599_v59, %v1598_v24 }
 0x5f8   : > { %v1601_v47 = vrot.slane %v1600_v34, 2 }
 0x5fa   : > { %v1602_v19 = vadd.f32 %v1601_v47, %v1600_v34 }
 0x5fc   : > { %v1603_v55 = vrot.slane %v1602_v19, 1 }
 0x5fe   : > { %v1604_v18 = vadd.f32 %v1603_v55, %v1602_v19 }
 0x646   : > { %v1670_v20 = vpop.xlane.xlu0 %1669 }
 0x647   : > { %2712 = vrcp.f32 %v1670_v20  ;;  %v1673_v49 = vpop.xlane.xlu2 %1672 }
 0x648   : > { %2714 = vrcp.f32 %v1673_v49 }
 0x649   : > { %v1777_v11 = vpop.xlane.xlu1 %1776 }
 0x64a   : > { %2716 = vrcp.f32 %v1777_v11 }
 0x64d   : > { %v2713_v9 = vpop.eup %2712 }
 0x64e   : > { %v2715_v40 = vpop.eup %2714  ;;  %v1696_v27 = vmul.f32 %v2713_v9, %v3717_v56  ;;  %v1881_v3 = vpop.xlane.xlu0 %1880 }
 0x64f   : > { %v1697_v0 = vmul.f32 %v2715_v40, %v3719_v58  ;;  %2718 = vrcp.f32 %v1881_v3  ;;  %v1774_v33 = vpop.xlane.xlu2 %1773  ;;  %v1592_v3 = vadd.f32 0.020833334, %v1590_v16 }
 0x650   : > { %v1698_v37 = vsel %vm838_vm3, %v1696_v27, 0.0  ;;  %2720 = vrcp.f32 %v1774_v33  ;;  %v2717_v29 = vpop.eup %2716 }
 0x651   : > { %v1699_v39 = vsel %vm838_vm3, %v1697_v0, 0.0  ;;  %v1878_v44 = vpop.xlane.xlu1 %1877  ;;  %v1801_v56 = vmul.f32 %v2717_v29, %v3727_v4  ;;  %v1605_v0 = vmul.f32 0.03125, %v1604_v18 }
 0x652   : > { %v1700_v30 = vadd.f32 %v1699_v39, %v1698_v37  ;;  %2722 = vrcp.f32 %v1878_v44 }
 0x653   : > { %v1803_v43 = vsel %vm838_vm3, %v1801_v56, 0.0 }
 0x654   : > { %v1701_v7 = vrot.slane %v1700_v30, 4 }
 0x655   : > { %v2719_v48 = vpop.eup %2718 }
 0x656   : > { %v2721_v25 = vpop.eup %2720  ;;  %v1702_v2 = vadd.f32 %v1701_v7, %v1700_v30  ;;  %v1905_v58 = vmul.f32 %v2719_v48, %v3736_v14 }
 0x657   : > { %v1800_v22 = vmul.f32 %v2721_v25, %v3723_v61  ;;  %v1591_v61 = vmul.f32 0.020833334, %v1589_v21 }
 0x658   : > { %v2723_v52 = vpop.eup %2722  ;;  %v1703_v35 = vrot.slane %v1702_v2, 2  ;;  %v1907_v50 = vsel %vm838_vm3, %v1905_v58, 0.0 }
 0x659   : > { %v1904_v41 = vmul.f32 %v2723_v52, %v3732_v15  ;;  %v1802_v8 = vsel %vm838_vm3, %v1800_v22, 0.0  ;;  %v1593_v20 = vadd.f32 0.020833334, %v1591_v61  ;;  %v1606_v22 = vadd.f32 0.03125, %v1605_v0 }
 0x65a   : > { %v1704_v51 = vadd.f32 %v1703_v35, %v1702_v2  ;;  %v1804_v53 = vadd.f32 %v1803_v43, %v1802_v8  ;;  %v1607_v2 = vmul.f32 %v1592_v3, %v3675_v38 }
 0x65b   : > { %v1906_v4 = vsel %vm838_vm3, %v1904_v41, 0.0  ;;  %v1608_v34 = vmul.f32 %v1593_v20, %v3675_v38 }
 0x65c   : > { %v1908_v60 = vadd.f32 %v1907_v50, %v1906_v4  ;;  %v1805_v6 = vrot.slane %v1804_v53, 4  ;;  %v1705_v14 = vrot.slane %v1704_v51, 1 }
 0x65e   : > { %v1909_v57 = vrot.slane %v1908_v60, 4  ;;  %v1806_v54 = vadd.f32 %v1805_v6, %v1804_v53  ;;  %v1706_v1 = vadd.f32 %v1705_v14, %v1704_v51 }
 0x65f   : > { %v1691_v63 = vpop.xlane.xlu0 %1690  ;;  %v1688_v62 = vpop.xlane.xlu1 %1687 }
 0x660   : > { %v1910_v5 = vadd.f32 %v1909_v57, %v1908_v60  ;;  %v1807_v15 = vrot.slane %v1806_v54, 2  ;;  %v1693_v28 = vmul.f32 0.020833334, %v1691_v63  ;;  %v1692_v10 = vmul.f32 0.020833334, %v1688_v62 }
 0x661   : > { %v1795_v42 = vpop.xlane.xlu2 %1794  ;;  %v1707_v9 = vmul.f32 0.03125, %v1706_v1 }
 0x662   : > { %v1695_v49 = vadd.f32 0.020833334, %v1693_v28  ;;  %v1797_v24 = vmul.f32 0.020833334, %v1795_v42  ;;  %v1808_v11 = vadd.f32 %v1807_v15, %v1806_v54  ;;  %v1694_v59 = vadd.f32 0.020833334, %v1692_v10 }
 0x663   : > { %v1911_v40 = vrot.slane %v1910_v5, 2  ;;  %v1708_v30 = vadd.f32 0.03125, %v1707_v9 }
 0x664   : > { %v1710_v21 = vmul.f32 %v1695_v49, %v3673_v12  ;;  %v1809_v27 = vrot.slane %v1808_v11, 1  ;;  %v1799_v37 = vadd.f32 0.020833334, %v1797_v24  ;;  %v1709_v13 = vmul.f32 %v1694_v59, %v3673_v12 }
 0x665   : > { %v1912_v33 = vadd.f32 %v1911_v40, %v1910_v5  ;;  %v1961_v51 = vsel %vm1260_vm4, %v1606_v22, %v1708_v30 }
 0x666   : > { %v1810_v39 = vadd.f32 %v1809_v27, %v1808_v11  ;;  %v1712_v7 = vadd.f32 %v1710_v21, %v1608_v34  ;;  %v1814_v19 = vmul.f32 %v1799_v37, %v3681_v23  ;;  %v1711_v50 = vadd.f32 %v1709_v13, %v1607_v2 }
 0x667   : > { %v1792_v44 = vpop.xlane.xlu0 %1791  ;;  %v1899_v29 = vpop.xlane.xlu1 %1898  ;;  %v1913_v47 = vrot.slane %v1912_v33, 1 }
 0x668   : > { %v1796_v48 = vmul.f32 0.020833334, %v1792_v44  ;;  %v1901_v56 = vmul.f32 0.020833334, %v1899_v29  ;;  %v1811_v25 = vmul.f32 0.03125, %v1810_v39  ;;  %v1816_v53 = vadd.f32 %v1814_v19, %v1712_v7 }
 0x669   : > { %v1896_v58 = vpop.xlane.xlu2 %1895  ;;  %v1914_v52 = vadd.f32 %v1913_v47, %v1912_v33 }
 0x66a   : > { %v1798_v35 = vadd.f32 0.020833334, %v1796_v48  ;;  %v1903_v43 = vadd.f32 0.020833334, %v1901_v56  ;;  %v1900_v41 = vmul.f32 0.020833334, %v1896_v58 }
 0x66b   : > { %v1812_v12 = vadd.f32 0.03125, %v1811_v25  ;;  %v1915_v8 = vmul.f32 0.03125, %v1914_v52 }
 0x66c   : > { %v1813_v4 = vmul.f32 %v1798_v35, %v3681_v23  ;;  %v1918_v60 = vmul.f32 %v1903_v43, %v3678_v17  ;;  %v1902_v6 = vadd.f32 0.020833334, %v1900_v41 }
 0x66d   : > { %v1916_v38 = vadd.f32 0.03125, %v1915_v8  ;;  %v1962_v14 = vsel %vm1262_vm5, %v1961_v51, %v1812_v12 }
 0x66e   : > { %v1815_v55 = vadd.f32 %v1813_v4, %v1711_v50  ;;  %v1920_v61 = vadd.f32 %v1918_v60, %v1816_v53  ;;  %v1917_v57 = vmul.f32 %v1902_v6, %v3678_v17 }
 0x66f   : > { %v1963_v54 = vsel %vm1264_vm6, %v1962_v14, %v1916_v38 }
 0x670   : > { %v1922_v63 = vadd.f32 %v3690_v36, %v1920_v61  ;;  %v1919_v62 = vadd.f32 %v1917_v57, %v1815_v55  ;;  %1964 = vxpose.xlu0.b32.start.end [1/1] (short) (narrow) %v1963_v54, 24 }
 0x672   : > { %v2455_v1 = vmul.f32 -1.442695, %v1922_v63  ;;  %v1921_v5 = vadd.f32 %v3690_v36, %v1919_v62 }
 0x674   : > { %2724 = vpow2.f32 %v2455_v1  ;;  %v2454_v23 = vmul.f32 -1.442695, %v1921_v5 }
 0x676   : > { %2726 = vpow2.f32 %v2454_v23 }
 0x67a   : > { %v2725_v15 = vpop.eup %2724 }
 0x67b   : > { %v1930_v28 = vadd.f32 1.0, %v2725_v15 }
 0x67c   : > { %v2727_v10 = vpop.eup %2726 }
 0x67d   : > { %2728 = vrcp.f32 %v1930_v28  ;;  %v1929_v16 = vadd.f32 1.0, %v2727_v10  ;;  %v1957_v49 = vand.u32 2147483648, %v1930_v28  ;;  %v1955_v59 = vand.u32 2147483647, %v1930_v28 }
 0x67e   : > { %vm1951_vm5 = vweird.f32 %v1930_v28 }
 0x67f   : > { %2730 = vrcp.f32 %v1929_v16  ;;  %v1942_v40 = vand.u32 2147483648, %v1929_v16  ;;  %v1958_v21 = vor.u32 1.1754944e-38, %v1957_v49  ;;  %v1940_v3 = vand.u32 2147483647, %v1929_v16 }
 0x680   : > { %vm1956_vm10 = vcmp.eq.f32.partialorder %v1955_v59, 8.507059e+37  ;;  %vm1936_vm11 = vweird.f32 %v1929_v16 }
 0x681   : > { %v1943_v39 = vor.u32 1.1754944e-38, %v1942_v40  ;;  %vm1941_vm13 = vcmp.eq.f32.partialorder %v1940_v3, 8.507059e+37 }
 0x683   : > { %v2729_v42 = vpop.eup %2728 }
 0x684   : > { %v1947_v17 = vmul.f32 %v2729_v42, %v1930_v28  ;;  %vm1952_vm3 = vweird.f32 %v2729_v42 }
 0x685   : > { %v2731_v18 = vpop.eup %2730  ;;  %vm1953_vm6 = vmor %vm1951_vm5, %vm1952_vm3 }
 0x686   : > { %v1948_v20 = vsub.f32 1.0, %v1947_v17  ;;  %v1932_v24 = vmul.f32 %v2731_v18, %v1929_v16  ;;  %vm1937_vm9 = vweird.f32 %v2731_v18 }
 0x687   : > { %vm1938_vm12 = vmor %vm1936_vm11, %vm1937_vm9 }
 0x688   : > { %v1949_v11 = vmul.f32 %v2729_v42, %v1948_v20  ;;  %v1933_v9 = vsub.f32 1.0, %v1932_v24 }
 0x68a   : > { %v1950_v36 = vadd.f32 %v2729_v42, %v1949_v11  ;;  %v1934_v27 = vmul.f32 %v2731_v18, %v1933_v9 }
 0x68c   : > { %v1954_v0 = vsel %vm1953_vm6, %v2729_v42, %v1950_v36  ;;  %v1935_v34 = vadd.f32 %v2731_v18, %v1934_v27 }
 0x68d   : > { %v1959_v33 = vsel %vm1956_vm10, %v1958_v21, %v1954_v0 }
 0x68e   : > { %v2089_v37 = vmul.f32 %v1959_v33, %v3433_v46  ;;  %2464 = vst.msk [vmem:[%s3697_s11 + $0x18] sm:$0xff] %vm714_vm0, %v1959_v33  ;;  %v1939_v13 = vsel %vm1938_vm12, %v2731_v18, %v1935_v34 }
 0x68f   : > { %v1944_v44 = vsel %vm1941_vm13, %v1943_v39, %v1939_v13 }
 0x690   : > { %v2091_v29 = vadd.f32 %v2089_v37, %v3433_v46  ;;  %v2088_v30 = vmul.f32 %v1944_v44, %v3431_v45  ;;  %2463 = vst.msk [vmem:[%s3697_s11 + $0x10] sm:$0xff] %vm714_vm0, %v1944_v44 }
 0x692   : > { %v2090_v47 = vadd.f32 %v2088_v30, %v3431_v45  ;;  %v2106_v7 = vsel %vm714_vm0, %v2091_v29, -inf }
 0x694   : > { %v2105_v48 = vsel %vm714_vm0, %v2090_v47, -inf }
 0x695   : > { %v3798_v56 = vmax.f32 %v2105_v48, %v2106_v7 }
 0x714   : > { %v1980_v25 = vpop.trf.xlu0 }
 0x715   : > { %2457 = vmatmul.msk.f32.vlgmr.msra.gmra.mxu0 %vm1301_vm7, %v1980_v25 }
 0x71c   : > { %v1981_v2 = vpop.trf.xlu0 }
 0x71d   : > { %2458 = vmatmul.msk.f32.gmra.mxu0 %vm1301_vm7, %v1981_v2 }
 0x724   : > { %v1982_v46 = vpop.trf.xlu0 }
 0x725   : > { %2459 = vmatmul.msk.f32.vlgmr.msra.gmra.mxu2 %vm1301_vm7, %v1982_v46 }
 0x726   : > { %2922 = shalt.err (!%p2919_p2)
}
 0x727   : > { %s3038_s9 = smov 128   ;;  %s3039_s11 = smov 8   ;;  %v2744_v58 = vld [vmem:[%s3971_s7] ss:$0 sm:$0xff]  ;;  %v2108_v34 = vrot.slane %v3798_v56, 4 }
 0x728   : > { %2521 = dma.vmem_to_hbm [thread:$0]  (%p3195_p7), %s2170_s26, 512, %s2172_s14, %s3810_s24, %s3038_s9, %s3038_s9, %s3039_s11  }
 0x729   : > { %s2505_s8 = smul.u32 48, %s3138_s17  ;;  %s3976_s14 = sld [smem:[#allocation35_spill]] }
 0x72a   : > { %s2187_s10 = sshll.u32 %s3628_s28, 4  ;;  %s2188_s10 = int_to_ptr.vmem [resolvable:$true] %s2187_s10 }
 0x72f   : > { %s2186_s22 = scalar_lea.hbm %s3976_s14, %s2505_s8  ;;  %s2943_s12 = scalar_lea.hbm %s3976_s14, 96 }
 0x730   : > { %s2189_s19 = sshll.u32 %s2186_s22, 4  ;;  %s2190_s19 = int_to_ptr.hbm [resolvable:$true] %s2189_s19 }
 0x731   : > { %s2937_s15 = sshra.s32 %s2190_s19, 4  ;;  %s2938_s15 = int_to_ptr.hbm [resolvable:$true] %s2937_s15 }
 0x732   : > { %s2939_s21 = scalar_lea.hbm %s2938_s15, 48  ;;  %p2944_p9 = scmp.lt.s32.totalorder %s2938_s15, %s3976_s14 }
 0x733   : > { %p2940_p13 = scmp.ne.s32.totalorder %s2938_s15, %s2939_s21  ;;  %p2945_p12 = scmp.lt.s32.totalorder %s2943_s12, %s2939_s21 }
 0x735   : > { %p2941_p0 = pnand %p2940_p13, %p3195_p7  ;;  %p2946_p4 = por %p2945_p12, %p2944_p9 }
 0x737   : > { %p2942_p8 = pneg %p2941_p0 }
 0x739   : > { %p2947_p3 = pnand %p2946_p4, %p2942_p8 }
 0x792   : > { %v2022_v45 = vpop.f32.mrf.mxu0 }
 0x793   : > { %v2023_v22 = vadd.f32 %v2744_v58, %v2022_v45 }
 0x795   : > { %v2460_v52 = vmul.f32 -1.442695, %v2023_v22 }
 0x797   : > { %2732 = vpow2.f32 %v2460_v52 }
 0x79a   : > { %v2025_v19 = vpop.f32.mrf.mxu0 }
 0x79b   : > { %v2026_v35 = vadd.f32 %v2744_v58, %v2025_v19 }
 0x79d   : > { %v2733_v43 = vpop.eup %2732  ;;  %v2461_v41 = vmul.f32 -1.442695, %v2026_v35 }
 0x79e   : > { %v2040_v50 = vadd.f32 1.0, %v2733_v43 }
 0x79f   : > { %2734 = vpow2.f32 %v2461_v41 }
 0x7a0   : > { %2736 = vrcp.f32 %v2040_v50  ;;  %v2054_v38 = vand.u32 2147483648, %v2040_v50  ;;  %v2052_v55 = vand.u32 2147483647, %v2040_v50  ;;  %vm2048_vm14 = vweird.f32 %v2040_v50 }
 0x7a2   : > { %v2055_v63 = vor.u32 1.1754944e-38, %v2054_v38  ;;  %vm2053_vm1 = vcmp.eq.f32.partialorder %v2052_v55, 8.507059e+37 }
 0x7a5   : > { %v2735_v12 = vpop.eup %2734 }
 0x7a6   : > { %v2737_v8 = vpop.eup %2736  ;;  %v2041_v51 = vadd.f32 1.0, %v2735_v12 }
 0x7a7   : > { %v2044_v53 = vmul.f32 %v2737_v8, %v2040_v50  ;;  %vm2049_vm7 = vweird.f32 %v2737_v8 }
 0x7a8   : > { %2738 = vrcp.f32 %v2041_v51  ;;  %v2028_v4 = vpop.f32.mrf.mxu2  ;;  %vm2050_vm15 = vmor %vm2048_vm14, %vm2049_vm7  ;;  %v2069_v15 = vand.u32 2147483648, %v2041_v51  ;;  %v2067_v16 = vand.u32 2147483647, %v2041_v51  ;;  %vm2063_vm3 = vweird.f32 %v2041_v51 }
 0x7a9   : > { %v2045_v60 = vsub.f32 1.0, %v2044_v53  ;;  %v2029_v6 = vadd.f32 %v2744_v58, %v2028_v4 }
 0x7aa   : > { %v2070_v18 = vor.u32 1.1754944e-38, %v2069_v15  ;;  %vm2068_vm6 = vcmp.eq.f32.partialorder %v2067_v16, 8.507059e+37 }
 0x7ab   : > { %v2046_v14 = vmul.f32 %v2737_v8, %v2045_v60  ;;  %v2462_v61 = vmul.f32 -1.442695, %v2029_v6 }
 0x7ad   : > { %v2047_v57 = vadd.f32 %v2737_v8, %v2046_v14  ;;  %2740 = vpow2.f32 %v2462_v61 }
 0x7ae   : > { %v2739_v54 = vpop.eup %2738 }
 0x7af   : > { %v2051_v62 = vsel %vm2050_vm15, %v2737_v8, %v2047_v57  ;;  %v2059_v1 = vmul.f32 %v2739_v54, %v2041_v51  ;;  %vm2064_vm2 = vweird.f32 %v2739_v54 }
 0x7b0   : > { %v2056_v5 = vsel %vm2053_vm1, %v2055_v63, %v2051_v62  ;;  %vm2065_vm5 = vmor %vm2063_vm3, %vm2064_vm2 }
 0x7b1   : > { %2465 = vst.msk [vmem:[%s3628_s28 + $0x18] sm:$0xff] %vm714_vm0, %v2056_v5  ;;  %v2060_v23 = vsub.f32 1.0, %v2059_v1  ;;  %v2092_v40 = vmul.f32 %v2056_v5, %v3372_v31 }
 0x7b3   : > { %v2741_v28 = vpop.eup %2740  ;;  %v2061_v10 = vmul.f32 %v2739_v54, %v2060_v23  ;;  %v2095_v37 = vadd.f32 %v2092_v40, %v3372_v31 }
 0x7b4   : > { %v2042_v42 = vadd.f32 1.0, %v2741_v28 }
 0x7b5   : > { %v2062_v17 = vadd.f32 %v2739_v54, %v2061_v10 }
 0x7b6   : > { %2742 = vrcp.f32 %v2042_v42  ;;  %v2084_v36 = vand.u32 2147483648, %v2042_v42  ;;  %v2082_v27 = vand.u32 2147483647, %v2042_v42  ;;  %vm2078_vm10 = vweird.f32 %v2042_v42 }
 0x7b7   : > { %v2066_v20 = vsel %vm2065_vm5, %v2739_v54, %v2062_v17 }
 0x7b8   : > { %v2071_v49 = vsel %vm2068_vm6, %v2070_v18, %v2066_v20  ;;  %v2085_v33 = vor.u32 1.1754944e-38, %v2084_v36  ;;  %vm2083_vm12 = vcmp.eq.f32.partialorder %v2082_v27, 8.507059e+37 }
 0x7b9   : > { %2466 = vst.msk [vmem:[%s3628_s28 + $0x20] sm:$0xff] %vm714_vm0, %v2071_v49  ;;  %v2093_v59 = vmul.f32 %v2071_v49, %v3374_v32 }
 0x7bb   : > { %v2096_v3 = vadd.f32 %v2093_v59, %v3374_v32  ;;  %v2109_v32 = vmax.f32 %v3798_v56, %v2108_v34 }
 0x7bc   : > { %v2743_v24 = vpop.eup %2742 }
 0x7bd   : > { %v2074_v11 = vmul.f32 %v2743_v24, %v2042_v42  ;;  %vm2079_vm9 = vweird.f32 %v2743_v24  ;;  %v2115_v44 = vsel %vm714_vm0, %v2096_v3, -inf }
 0x7be   : > { %vm2080_vm11 = vmor %vm2078_vm10, %vm2079_vm9 }
 0x7bf   : > { %v2075_v9 = vsub.f32 1.0, %v2074_v11 }
 0x7c1   : > { %v2076_v21 = vmul.f32 %v2743_v24, %v2075_v9 }
 0x7c3   : > { %v2077_v0 = vadd.f32 %v2743_v24, %v2076_v21 }
 0x7c5   : > { %v2081_v39 = vsel %vm2080_vm11, %v2743_v24, %v2077_v0 }
 0x7c6   : > { %v2086_v13 = vsel %vm2083_vm12, %v2085_v33, %v2081_v39 }
 0x7c7   : > { %v2094_v29 = vmul.f32 %v2086_v13, %v3361_v26  ;;  %2467 = vst.msk [vmem:[%s3628_s28 + $0x28] sm:$0xff] %vm714_vm0, %v2086_v13 }
 0x7c8   : > { %2950 = shalt.err (!%p2947_p3)
}
 0x7c9   : > { %2522 = dma.vmem_to_hbm [thread:$0]  (%p3195_p7), %s2188_s10, 768, %s2190_s19, %s3810_s24, %s3038_s9, %s3038_s9, %s3039_s11   ;;  %v2114_v31 = vsel %vm714_vm0, %v2095_v37, -inf  ;;  %v2097_v30 = vadd.f32 %v2094_v29, %v3361_v26  ;;  %v2110_v56 = vrot.slane %v2109_v32, 2 }
 0x7ca   : > { %v2117_v47 = vmax.f32 %v2114_v31, %v2115_v44  ;;  %s2482_s28 = sshll.u32 %s3138_s17, 2  ;;  %s3977_s22 = sld [smem:[#allocation33_spill]] }
 0x7cb   : > { %v2116_v7 = vsel %vm714_vm0, %v2097_v30, -inf  ;;  %v2111_v46 = vmax.f32 %v2109_v32, %v2110_v56  ;;  %s2151_s9 = sshll.u32 %s3743_s25, 4  ;;  %s2129_s17 = scalar_lea.sflag [#allocation4], %s3291_s18  ;;  %s2152_s9 = int_to_ptr.vmem [resolvable:$true] %s2151_s9 }
 0x7cc   : > { %v2118_v48 = vmax.f32 %v2117_v47, %v2116_v7 }
 0x7cd   : > { %v2112_v58 = vrot.slane %v2111_v46, 1 }
 0x7ce   : > { %v2119_v25 = vrot.slane %v2118_v48, 4 }
 0x7cf   : > { %v2113_v52 = vmax.f32 %v2111_v46, %v2112_v58 }
 0x7d0   : > { %v2120_v2 = vmax.f32 %v2118_v48, %v2119_v25  ;;  %s2150_s24 = scalar_lea.hbm %s3977_s22, %s2482_s28  ;;  %s2971_s29 = scalar_lea.hbm %s3977_s22, 8 }
 0x7d1   : > { %s2153_s11 = sshll.u32 %s2150_s24, 4  ;;  %s2154_s11 = int_to_ptr.hbm [resolvable:$true] %s2153_s11 }
 0x7d2   : > { %v2121_v45 = vrot.slane %v2120_v2, 2  ;;  %s2965_s10 = sshra.s32 %s2154_s11, 4  ;;  %s2966_s10 = int_to_ptr.hbm [resolvable:$true] %s2965_s10 }
 0x7d3   : > { %s2967_s19 = scalar_lea.hbm %s2966_s10, 4  ;;  %p2972_p11 = scmp.lt.s32.totalorder %s2966_s10, %s3977_s22 }
 0x7d4   : > { %v2122_v22 = vmax.f32 %v2120_v2, %v2121_v45  ;;  %p2968_p5 = scmp.ne.s32.totalorder %s2966_s10, %s2967_s19  ;;  %p2973_p2 = scmp.lt.s32.totalorder %s2971_s29, %s2967_s19 }
 0x7d6   : > { %v2123_v26 = vrot.slane %v2122_v22, 1  ;;  %p2969_p1 = pnand %p2968_p5, %p3195_p7  ;;  %p2974_p13 = por %p2973_p2, %p2972_p11 }
 0x7d8   : > { %v2124_v19 = vmax.f32 %v2122_v22, %v2123_v26  ;;  %p2970_p10 = pneg %p2969_p1 }
 0x7da   : > { %v2125_v35 = vsel %vm1260_vm4, %v2113_v52, %v2124_v19  ;;  %p2975_p0 = pnand %p2974_p13, %p2970_p10 }
 0x7db   : > { %2468 = vst.msk [vmem:[%s3743_s25 + $0x2] sm:$0x3] %vm1433_vm8, %v2125_v35 }
 0x7dc   : > { %2978 = shalt.err (!%p2975_p0)
}
 0x7dd   : > { %s3040_s18 = smov 32   ;;  %s3041_s25 = smov 2  }
 0x7de   : > { %2520 = dma.vmem_to_hbm [thread:$0]  (%p3195_p7), %s2152_s9, 64, %s2154_s11, %s2129_s17, %s3040_s18, %s3040_s18, %s3041_s25  }
 0x7df PF: > { %s3978_s2 = sld [smem:[#allocation20_spill]]  ;;  %p3980_p8 = scmp.ge.s32.totalorder %s3029_s16, 2 }
 0x7e1   : > { %p2544_p9 = pnand %p3980_p8, %p3154_p6 }
 0x7e3   : > { %p2545_p12 = pneg %p2544_p9 }
 0x7e5   : > { %s2204_s28 = sand.u32 1, %s3978_s2  }
 0x7e6   : > { %s2205_s13 = scalar_lea.sflag [#allocation4], %s2204_s28 }
 0x7e7   : > { %3008 = dma.done.wait (%p2545_p12), %s2205_s13, 64  }
 0x7e8   : > { %3010 = vsyncadd (%p2545_p12), %s2205_s13, 4294967232  ;;  %s3981_s26 = sadd.s32 4294967294, %s3029_s16  }
 0x7e9   : > { %s2214_s24 = sand.u32 1, %s3981_s26  }
 0x7ea   : > { %s2215_s10 = scalar_lea.sflag [#allocation13], %s2214_s24 }
 0x7eb   : > { %3012 = dma.done.wait (%p2545_p12), %s2215_s10, 1280  }
 0x7ec   : > { %3014 = vsyncadd (%p2545_p12), %s2215_s10, 4294966016  ;;  %s3982_s16 = sld [smem:[#allocation23_spill]]  ;;  %s3985_s29 = smov %s3021_s30 }
 0x7ed   : > { %s3983_s20 = sld [smem:[#allocation21_spill]] }
 0x7ee   : > { %s3984_s15 = sld [smem:[#allocation24_spill]] }
 0x7f2   : > { %p35_p7 = scmp.ge.s32.totalorder %s3982_s16, 4  }
 0x7f3   : > { %s3986_s30 = smov %s3983_s20 }
 0x7f4   :  { %37 = sbr.rel (!%p35_p7) target bundleno = 21 (0x15), region = 187 }
 0x7f9   :  { %2231 = vsyncpa [#allocation3], 1 }
 0x7fa   :  { %2233 = vsyncpa [#allocation3 + $0x1], 1 }
 0x7fb   :  { %2234 = vsyncpa [#allocation6], 1 }
 0x7fc   :  { %2236 = vsyncpa [#allocation6 + $0x1], 1 }
 0x7fd   :  { %2237 = vsyncpa [#allocation9], 1 }
 0x7fe   :  { %2238 = vsyncpa [#allocation4], 1 }
 0x7ff   :  { %2240 = vsyncpa [#allocation4 + $0x1], 1 }
 0x800   :  { %2241 = vsyncpa [#allocation13], 1 }
 0x801   :  { %2243 = vsyncpa [#allocation13 + $0x1], 1 }

</bundles_post_ra>
